<compile_context>
chip_gen: v6e
topology: v6e:2x2x1
jax: 0.10.0
libtpu: 0.0.40
codegen_flags: <defaults>
</compile_context>

<pallas_src>
import math

import jax
import jax.numpy as jnp
import numpy as np
from jax import lax
from jax.experimental import pallas as pl
from jax.experimental.pallas import tpu as pltpu


def _lfpe_kernel(x_ref, wr_ref, w1c_ref, w1s_ref, b1_ref, w2_ref, b2_ref, out_ref):
    """One row-tile of the forward pass.

    x_ref   : [TR, G*M]        flattened positions (G folded into lanes)
    wr_ref  : [G*M, G*F/2]     block-diagonal Fourier projection (no bias)
    w1c_ref : [G*F/2, G*H]     block-diag (1/sqrt(F)) * W1[:F/2]  (cos half)
    w1s_ref : [G*F/2, G*H]     block-diag (1/sqrt(F)) * W1[F/2:]  (sin half)
    b1_ref  : [1, G*H]
    w2_ref  : [G*H, D]         block-diagonal second MLP layer
    b2_ref  : [1, D]
    out_ref : [TR, D]          lane-dense output
    """
    x = x_ref[...]

    # Fourier projection (per group, via block-diagonal weight)
    proj = jnp.dot(x, wr_ref[...], preferred_element_type=jnp.float32)      # [TR, G*F/2]

    # F = 1/sqrt(F_dim) * [cos(proj), sin(proj)] -- scale folded into w1c/w1s,
    # concat replaced by two matmuls (no cross-lane shuffle).
    h = (jnp.dot(jnp.cos(proj), w1c_ref[...], preferred_element_type=jnp.float32)
         + jnp.dot(jnp.sin(proj), w1s_ref[...], preferred_element_type=jnp.float32)
         + b1_ref[...])

    # exact GELU (erf-based), matches torch.nn.GELU() default
    h = 0.5 * h * (1.0 + lax.erf(h * (1.0 / math.sqrt(2.0))))

    y = jnp.dot(h, w2_ref[...], preferred_element_type=jnp.float32) + b2_ref[...]
    out_ref[...] = y.astype(out_ref.dtype)


def _block_diag(w, G):
    """[K, N] -> [G*K, G*N] block-diagonal replication (done once, host/param side)."""
    K, Nc = w.shape
    out = jnp.zeros((G * K, G * Nc), w.dtype)
    for g in range(G):
        out = out.at[g * K:(g + 1) * K, g * Nc:(g + 1) * Nc].set(w)
    return out


def prepare_params(wr, w1, b1, w2, b2, G):
    """One-time weight transform: scale-fold, cos/sin split, block-diagonalize.

    wr: [M, F/2], w1: [F, H], b1: [H], w2: [H, D/G], b2: [D/G]
    (weights stored [in, out], i.e. transposed vs. nn.Linear.weight)
    """
    M, F2 = wr.shape
    F_dim = 2 * F2
    H = w1.shape[1]
    DG = w2.shape[1]
    scale = 1.0 / math.sqrt(F_dim)

    w1c = w1[:F2] * scale          # cos half, scale folded in
    w1s = w1[F2:] * scale          # sin half, scale folded in

    wr_blk = _block_diag(wr, G)                     # [G*M,   G*F/2]
    w1c_blk = _block_diag(w1c, G)                   # [G*F/2, G*H]
    w1s_blk = _block_diag(w1s, G)                   # [G*F/2, G*H]
    b1_blk = jnp.tile(b1, G).reshape(1, G * H)      # [1, G*H]
    w2_blk = _block_diag(w2, G)                     # [G*H,   G*DG] = [G*H, D]
    b2_blk = jnp.tile(b2, G).reshape(1, G * DG)     # [1, D]
    return wr_blk, w1c_blk, w1s_blk, b1_blk, w2_blk, b2_blk


# ---------------------------------------------------------------------------
# Generation-aware tiling.
# ---------------------------------------------------------------------------

def _lane_pad(n):
    return ((n + 127) // 128) * 128


def _round_up8(n):
    return ((n + 7) // 8) * 8


def _tpu_config():
    """Return (vmem_limit_bytes, two_tensorcores) for the local TPU generation."""
    kind = ""
    try:
        kind = jax.devices()[0].device_kind.lower()
    except Exception:
        pass
    if "v7" in kind:
        # v7x: 64 MiB physical VMEM per TensorCore, 2 TCs per chip -> leave headroom.
        return 48 * 1024 * 1024, True
    # v5e / v6e: 128 MiB physical VMEM, single TensorCore.
    return 64 * 1024 * 1024, False


def _max_tile_rows(vmem_budget, GM, GF2, GH, D, weight_buffers):
    """Largest row tile (multiple of 8) whose f32 working set fits the VMEM budget."""
    bytes_per_row = 4 * (
        2 * _lane_pad(GM)      # x tile, double-buffered (lane-padded: GM << 128)
        + 2 * _lane_pad(D)     # out tile, double-buffered
        + 3 * _lane_pad(GF2)   # proj, cos(proj), sin(proj)
        + _lane_pad(GH)        # hidden activations
        + _lane_pad(D)         # y before store
    )
    weight_bytes = 4 * weight_buffers * (
        GM * _lane_pad(GF2) + 2 * GF2 * _lane_pad(GH) + _lane_pad(GH)
        + GH * _lane_pad(D) + _lane_pad(D)
    )
    headroom = 4 * 1024 * 1024
    avail = max(vmem_budget - weight_bytes - headroom, 8 * bytes_per_row)
    tr = (avail // bytes_per_row) // 8 * 8
    return int(max(8, min(tr, 8192)))


def _choose_tile_rows(R, max_tr, two_cores):
    full = _round_up8(R)
    if not two_cores:
        # Single TensorCore: as few / as large steps as VMEM allows (1 step if it fits).
        return max(8, min(max_tr, full))
    # v7x megacore: aim for an even step count >= 2 so both TCs get balanced work.
    steps = max(2, pl.cdiv(R, max_tr))
    if steps % 2:
        steps += 1
    return max(8, min(max_tr, _round_up8(pl.cdiv(R, steps))))


# ---------------------------------------------------------------------------
# Wrapper.
# ---------------------------------------------------------------------------

def learnable_fourier_pe(x, wr_blk, w1c_blk, w1s_blk, b1_blk, w2_blk, b2_blk,
                         *, D, tile_rows=None):
    """x: [B, N, G, M] float32.  Returns PEx: [B, N, D] float32."""
    B, N, G, M = x.shape
    R = B * N
    GM = G * M
    GF2 = wr_blk.shape[1]
    GH = w1c_blk.shape[1]
    assert w2_blk.shape == (GH, D)

    x2d = x.reshape(R, GM)                       # row (b,n) = concat over g of x[b,n,g,:]

    vmem_limit, two_cores = _tpu_config()
    if tile_rows is None:
        max_tr = _max_tile_rows(vmem_limit, GM, GF2, GH, D, weight_buffers=1)
        tr = _choose_tile_rows(R, max_tr, two_cores)
    else:
        tr = max(8, (int(tile_rows) // 8) * 8)
    grid = (pl.cdiv(R, tr),)                     # ragged final block handled by Pallas

    # Advisory cost estimate (matmuls + elementwise; cos/sin/erf as transcendentals).
    matmul_flops = 2 * R * (GM * GF2 + 2 * GF2 * GH + GH * D)
    cost = pl.CostEstimate(
        flops=int(matmul_flops + 6 * R * GH + 2 * R * D),
        transcendentals=int(R * (2 * GF2 + GH)),
        bytes_accessed=int(4 * (R * GM + R * D
                                + GM * GF2 + 2 * GF2 * GH + GH + GH * D + D)),
    )

    def build_and_run(single_buffer_weights):
        if single_buffer_weights and hasattr(pl, "Buffered"):
            # Constant index_map -> the block never changes; single buffer halves
            # resident weight VMEM (matters most on v7x's 64 MiB per TC).
            def const_spec(shape):
                return pl.BlockSpec(shape, lambda i: (0,) * len(shape),
                                    pipeline_mode=pl.Buffered(1))
        else:
            def const_spec(shape):
                return pl.BlockSpec(shape, lambda i: (0,) * len(shape))

        return pl.pallas_call(
            _lfpe_kernel,
            out_shape=jax.ShapeDtypeStruct((R, D), jnp.float32),
            grid_spec=pltpu.PrefetchScalarGridSpec(
                num_scalar_prefetch=0,
                grid=grid,
                in_specs=[
                    pl.BlockSpec((tr, GM), lambda i: (i, 0)),    # x rows (streamed)
                    const_spec((GM, GF2)),                       # Wr block-diag (resident)
                    const_spec((GF2, GH)),                       # W1 cos half (scale folded)
                    const_spec((GF2, GH)),                       # W1 sin half (scale folded)
                    const_spec((1, GH)),                         # b1
                    const_spec((GH, D)),                         # W2 block-diag
                    const_spec((1, D)),                          # b2
                ],
                out_specs=pl.BlockSpec((tr, D), lambda i: (i, 0)),   # lane-dense output
            ),
            compiler_params=pltpu.CompilerParams(
                dimension_semantics=("parallel",),
                vmem_limit_bytes=vmem_limit,
            ),
            cost_estimate=cost,
        )(x2d, wr_blk, w1c_blk, w1s_blk, b1_blk, w2_blk, b2_blk)

    try:
        out2d = build_and_run(single_buffer_weights=True)
    except Exception:
        # Fallback for JAX versions without BlockSpec(pipeline_mode=...) support.
        out2d = build_and_run(single_buffer_weights=False)

    return out2d.reshape(B, N, D)


def _reference(x, wr, w1, b1, w2, b2, D):
    """Pure-JAX reference mirroring the PyTorch forward (unsplit weights)."""
    B, N, G, M = x.shape
    F_dim = 2 * wr.shape[1]
    proj = x @ wr                                           # [B,N,G,F/2]
    f = (1.0 / math.sqrt(F_dim)) * jnp.concatenate(
        [jnp.cos(proj), jnp.sin(proj)], axis=-1)            # [B,N,G,F]
    h = f @ w1 + b1
    h = 0.5 * h * (1.0 + lax.erf(h / math.sqrt(2.0)))       # exact GELU
    y = h @ w2 + b2                                         # [B,N,G,D/G]
    return y.reshape(B, N, D)


if __name__ == "__main__":
    # Module hyper-parameters (small, consistent with the forward signature).
    # D chosen as a multiple of 128 so the dominant output store stream is lane-dense.
    G, M = 2, 4
    F_dim, H_dim, D = 64, 32, 128
    gamma = 1.0
    B, N = 2, 10   # B*N = 20 -> exercises the ragged final block / multi-step grid on v7x

    key = jax.random.PRNGKey(0)
    k_x, k_wr, k_w1, k_b1, k_w2, k_b2 = jax.random.split(key, 6)

    # Deterministic synthetic parameters (shapes from __init__; stored [in, out]).
    # Wr ~ N(0, gamma^-2) per init_weights(); MLP weights small.
    wr = (gamma ** -2) * jax.random.normal(k_wr, (M, F_dim // 2), dtype=jnp.float32)
    w1 = 0.1 * jax.random.normal(k_w1, (F_dim, H_dim), dtype=jnp.float32)
    b1 = 0.1 * jax.random.normal(k_b1, (H_dim,), dtype=jnp.float32)
    w2 = 0.1 * jax.random.normal(k_w2, (H_dim, D // G), dtype=jnp.float32)
    b2 = 0.1 * jax.random.normal(k_b2, (D // G,), dtype=jnp.float32)

    # Input positions x: [B, N, G, M]
    x = jax.random.normal(k_x, (B, N, G, M), dtype=jnp.float32)

    # One-time weight transform (scale fold + cos/sin split + block-diagonalize over G)
    params = prepare_params(wr, w1, b1, w2, b2, G)

    out = learnable_fourier_pe(x, *params, D=D)
    out = jax.block_until_ready(out)

    ref = _reference(x, wr, w1, b1, w2, b2, D)
    np.testing.assert_allclose(np.asarray(out), np.asarray(ref), rtol=2e-5, atol=2e-5)

    assert out.shape == (B, N, D)
    print("KERNEL_OK")
</pallas_src>

<mosaic_0001>
module attributes {stable_mosaic.version = 11 : i64} {
  func.func @_lfpe_kernel(%arg0: i32, %arg1: memref<24x8xf32, #tpu.memory_space<vmem>>, %arg2: memref<8x64xf32, #tpu.memory_space<vmem>>, %arg3: memref<64x64xf32, #tpu.memory_space<vmem>>, %arg4: memref<64x64xf32, #tpu.memory_space<vmem>>, %arg5: memref<1x64xf32, #tpu.memory_space<vmem>>, %arg6: memref<64x128xf32, #tpu.memory_space<vmem>>, %arg7: memref<1x128xf32, #tpu.memory_space<vmem>>, %arg8: memref<24x128xf32, #tpu.memory_space<vmem>>) attributes {dimension_semantics = [#tpu.dimension_semantics<parallel>], iteration_bounds = array<i64: 1>, scalar_prefetch = 0 : i64, scratch_operands = 0 : i64, tpu.core_type = #tpu.core_type<tc>, window_params = [{transform_indices = @transform_0, window_bounds = array<i64: 24, 8>}, {pipeline_mode = #tpu.pipeline_mode<synchronous>, transform_indices = @transform_1, window_bounds = array<i64: 8, 64>}, {pipeline_mode = #tpu.pipeline_mode<synchronous>, transform_indices = @transform_2, window_bounds = array<i64: 64, 64>}, {pipeline_mode = #tpu.pipeline_mode<synchronous>, transform_indices = @transform_3, window_bounds = array<i64: 64, 64>}, {pipeline_mode = #tpu.pipeline_mode<synchronous>, transform_indices = @transform_4, window_bounds = array<i64: 1, 64>}, {pipeline_mode = #tpu.pipeline_mode<synchronous>, transform_indices = @transform_5, window_bounds = array<i64: 64, 128>}, {pipeline_mode = #tpu.pipeline_mode<synchronous>, transform_indices = @transform_6, window_bounds = array<i64: 1, 128>}, {transform_indices = @transform_7, window_bounds = array<i64: 24, 128>}]} {
    %c0 = arith.constant 0 : index
    %c0_0 = arith.constant 0 : index
    %0 = vector.load %arg1[%c0, %c0_0] : memref<24x8xf32, #tpu.memory_space<vmem>>, vector<24x8xf32>
    %c0_1 = arith.constant 0 : index
    %c0_2 = arith.constant 0 : index
    %1 = vector.load %arg2[%c0_1, %c0_2] : memref<8x64xf32, #tpu.memory_space<vmem>>, vector<8x64xf32>
    %cst = arith.constant dense<0.000000e+00> : vector<24x64xf32>
    %2 = tpu.matmul %0, %1, %cst {dimension_numbers = #tpu.dot_dimension_numbers<[1], [0], [0], [1], [0, 0, 1, 1], [], []>} : vector<24x8xf32>, vector<8x64xf32>, vector<24x64xf32> -> vector<24x64xf32>
    %3 = math.cos %2 : vector<24x64xf32>
    %c0_3 = arith.constant 0 : index
    %c0_4 = arith.constant 0 : index
    %4 = vector.load %arg3[%c0_3, %c0_4] : memref<64x64xf32, #tpu.memory_space<vmem>>, vector<64x64xf32>
    %cst_5 = arith.constant dense<0.000000e+00> : vector<24x64xf32>
    %5 = tpu.matmul %3, %4, %cst_5 {dimension_numbers = #tpu.dot_dimension_numbers<[1], [0], [0], [1], [0, 0, 1, 1], [], []>} : vector<24x64xf32>, vector<64x64xf32>, vector<24x64xf32> -> vector<24x64xf32>
    %6 = math.sin %2 : vector<24x64xf32>
    %c0_6 = arith.constant 0 : index
    %c0_7 = arith.constant 0 : index
    %7 = vector.load %arg4[%c0_6, %c0_7] : memref<64x64xf32, #tpu.memory_space<vmem>>, vector<64x64xf32>
    %cst_8 = arith.constant dense<0.000000e+00> : vector<24x64xf32>
    %8 = tpu.matmul %6, %7, %cst_8 {dimension_numbers = #tpu.dot_dimension_numbers<[1], [0], [0], [1], [0, 0, 1, 1], [], []>} : vector<24x64xf32>, vector<64x64xf32>, vector<24x64xf32> -> vector<24x64xf32>
    %9 = arith.addf %5, %8 : vector<24x64xf32>
    %c0_9 = arith.constant 0 : index
    %c0_10 = arith.constant 0 : index
    %10 = vector.load %arg5[%c0_9, %c0_10] : memref<1x64xf32, #tpu.memory_space<vmem>>, vector<1x64xf32>
    %11 = vector.broadcast %10 : vector<1x64xf32> to vector<24x64xf32>
    %12 = arith.addf %9, %11 : vector<24x64xf32>
    %cst_11 = arith.constant 5.000000e-01 : f32
    %13 = vector.broadcast %cst_11 : f32 to vector<24x64xf32>
    %14 = arith.mulf %13, %12 : vector<24x64xf32>
    %cst_12 = arith.constant 0.707106769 : f32
    %15 = vector.broadcast %cst_12 : f32 to vector<24x64xf32>
    %16 = arith.mulf %12, %15 : vector<24x64xf32>
    %17 = math.erf %16 : vector<24x64xf32>
    %cst_13 = arith.constant 1.000000e+00 : f32
    %18 = vector.broadcast %cst_13 : f32 to vector<24x64xf32>
    %19 = arith.addf %18, %17 : vector<24x64xf32>
    %20 = arith.mulf %14, %19 : vector<24x64xf32>
    %c0_14 = arith.constant 0 : index
    %c0_15 = arith.constant 0 : index
    %21 = vector.load %arg6[%c0_14, %c0_15] : memref<64x128xf32, #tpu.memory_space<vmem>>, vector<64x128xf32>
    %cst_16 = arith.constant dense<0.000000e+00> : vector<24x128xf32>
    %22 = tpu.matmul %20, %21, %cst_16 {dimension_numbers = #tpu.dot_dimension_numbers<[1], [0], [0], [1], [0, 0, 1, 1], [], []>} : vector<24x64xf32>, vector<64x128xf32>, vector<24x128xf32> -> vector<24x128xf32>
    %c0_17 = arith.constant 0 : index
    %c0_18 = arith.constant 0 : index
    %23 = vector.load %arg7[%c0_17, %c0_18] : memref<1x128xf32, #tpu.memory_space<vmem>>, vector<1x128xf32>
    %24 = vector.broadcast %23 : vector<1x128xf32> to vector<24x128xf32>
    %25 = arith.addf %22, %24 : vector<24x128xf32>
    %c0_19 = arith.constant 0 : index
    %c0_20 = arith.constant 0 : index
    %26 = vector.load %arg8[%c0_19, %c0_20] : memref<24x128xf32, #tpu.memory_space<vmem>>, vector<24x128xf32>
    tpu.vector_store %arg8[%c0_19, %c0_20], %25 {strides = array<i32>} : memref<24x128xf32, #tpu.memory_space<vmem>>, vector<24x128xf32>,
    return
  }
  func.func @transform_0(%arg0: i32) -> (i32, i32) {
    %c0_i32 = arith.constant 0 : i32
    %c0_i32_0 = arith.constant 0 : i32
    return %arg0, %c0_i32 : i32, i32
  }
  func.func @transform_1(%arg0: i32) -> (i32, i32) {
    %c0_i32 = arith.constant 0 : i32
    %c0_i32_0 = arith.constant 0 : i32
    %c0_i32_1 = arith.constant 0 : i32
    return %c0_i32, %c0_i32_0 : i32, i32
  }
  func.func @transform_2(%arg0: i32) -> (i32, i32) {
    %c0_i32 = arith.constant 0 : i32
    %c0_i32_0 = arith.constant 0 : i32
    %c0_i32_1 = arith.constant 0 : i32
    return %c0_i32, %c0_i32_0 : i32, i32
  }
  func.func @transform_3(%arg0: i32) -> (i32, i32) {
    %c0_i32 = arith.constant 0 : i32
    %c0_i32_0 = arith.constant 0 : i32
    %c0_i32_1 = arith.constant 0 : i32
    return %c0_i32, %c0_i32_0 : i32, i32
  }
  func.func @transform_4(%arg0: i32) -> (i32, i32) {
    %c0_i32 = arith.constant 0 : i32
    %c0_i32_0 = arith.constant 0 : i32
    %c0_i32_1 = arith.constant 0 : i32
    return %c0_i32, %c0_i32_0 : i32, i32
  }
  func.func @transform_5(%arg0: i32) -> (i32, i32) {
    %c0_i32 = arith.constant 0 : i32
    %c0_i32_0 = arith.constant 0 : i32
    %c0_i32_1 = arith.constant 0 : i32
    return %c0_i32, %c0_i32_0 : i32, i32
  }
  func.func @transform_6(%arg0: i32) -> (i32, i32) {
    %c0_i32 = arith.constant 0 : i32
    %c0_i32_0 = arith.constant 0 : i32
    %c0_i32_1 = arith.constant 0 : i32
    return %c0_i32, %c0_i32_0 : i32, i32
  }
  func.func @transform_7(%arg0: i32) -> (i32, i32) {
    %c0_i32 = arith.constant 0 : i32
    %c0_i32_0 = arith.constant 0 : i32
    return %arg0, %c0_i32 : i32, i32
  }
}

module attributes {stable_mosaic.version = 11 : i64} {
  func.func @_lfpe_kernel(%arg0: i32, %arg1: memref<24x8xf32, #tpu.memory_space<vmem>>, %arg2: memref<8x64xf32, #tpu.memory_space<vmem>>, %arg3: memref<64x64xf32, #tpu.memory_space<vmem>>, %arg4: memref<64x64xf32, #tpu.memory_space<vmem>>, %arg5: memref<1x64xf32, #tpu.memory_space<vmem>>, %arg6: memref<64x128xf32, #tpu.memory_space<vmem>>, %arg7: memref<1x128xf32, #tpu.memory_space<vmem>>, %arg8: memref<24x128xf32, #tpu.memory_space<vmem>>) attributes {dimension_semantics = [#tpu.dimension_semantics<parallel>], iteration_bounds = array<i64: 1>, scalar_prefetch = 0 : i64, scratch_operands = 0 : i64, tpu.core_type = #tpu.core_type<tc>, window_params = [{transform_indices = @transform_0, window_bounds = array<i64: 24, 8>}, {pipeline_mode = #tpu.pipeline_mode<synchronous>, transform_indices = @transform_1, window_bounds = array<i64: 8, 64>}, {pipeline_mode = #tpu.pipeline_mode<synchronous>, transform_indices = @transform_2, window_bounds = array<i64: 64, 64>}, {pipeline_mode = #tpu.pipeline_mode<synchronous>, transform_indices = @transform_3, window_bounds = array<i64: 64, 64>}, {pipeline_mode = #tpu.pipeline_mode<synchronous>, transform_indices = @transform_4, window_bounds = array<i64: 1, 64>}, {pipeline_mode = #tpu.pipeline_mode<synchronous>, transform_indices = @transform_5, window_bounds = array<i64: 64, 128>}, {pipeline_mode = #tpu.pipeline_mode<synchronous>, transform_indices = @transform_6, window_bounds = array<i64: 1, 128>}, {transform_indices = @transform_7, window_bounds = array<i64: 24, 128>}]} {
    %c0 = arith.constant 0 : index
    %c0_0 = arith.constant 0 : index
    %0 = vector.load %arg1[%c0, %c0_0] : memref<24x8xf32, #tpu.memory_space<vmem>>, vector<24x8xf32>
    %c0_1 = arith.constant 0 : index
    %c0_2 = arith.constant 0 : index
    %1 = vector.load %arg2[%c0_1, %c0_2] : memref<8x64xf32, #tpu.memory_space<vmem>>, vector<8x64xf32>
    %cst = arith.constant dense<0.000000e+00> : vector<24x64xf32>
    %2 = tpu.matmul %0, %1, %cst {dimension_numbers = #tpu.dot_dimension_numbers<[1], [0], [0], [1], [0, 0, 1, 1], [], []>} : vector<24x8xf32>, vector<8x64xf32>, vector<24x64xf32> -> vector<24x64xf32>
    %3 = math.cos %2 : vector<24x64xf32>
    %c0_3 = arith.constant 0 : index
    %c0_4 = arith.constant 0 : index
    %4 = vector.load %arg3[%c0_3, %c0_4] : memref<64x64xf32, #tpu.memory_space<vmem>>, vector<64x64xf32>
    %cst_5 = arith.constant dense<0.000000e+00> : vector<24x64xf32>
    %5 = tpu.matmul %3, %4, %cst_5 {dimension_numbers = #tpu.dot_dimension_numbers<[1], [0], [0], [1], [0, 0, 1, 1], [], []>} : vector<24x64xf32>, vector<64x64xf32>, vector<24x64xf32> -> vector<24x64xf32>
    %6 = math.sin %2 : vector<24x64xf32>
    %c0_6 = arith.constant 0 : index
    %c0_7 = arith.constant 0 : index
    %7 = vector.load %arg4[%c0_6, %c0_7] : memref<64x64xf32, #tpu.memory_space<vmem>>, vector<64x64xf32>
    %cst_8 = arith.constant dense<0.000000e+00> : vector<24x64xf32>
    %8 = tpu.matmul %6, %7, %cst_8 {dimension_numbers = #tpu.dot_dimension_numbers<[1], [0], [0], [1], [0, 0, 1, 1], [], []>} : vector<24x64xf32>, vector<64x64xf32>, vector<24x64xf32> -> vector<24x64xf32>
    %9 = arith.addf %5, %8 : vector<24x64xf32>
    %c0_9 = arith.constant 0 : index
    %c0_10 = arith.constant 0 : index
    %10 = vector.load %arg5[%c0_9, %c0_10] : memref<1x64xf32, #tpu.memory_space<vmem>>, vector<1x64xf32>
    %11 = vector.broadcast %10 : vector<1x64xf32> to vector<24x64xf32>
    %12 = arith.addf %9, %11 : vector<24x64xf32>
    %cst_11 = arith.constant 5.000000e-01 : f32
    %13 = vector.broadcast %cst_11 : f32 to vector<24x64xf32>
    %14 = arith.mulf %13, %12 : vector<24x64xf32>
    %cst_12 = arith.constant 0.707106769 : f32
    %15 = vector.broadcast %cst_12 : f32 to vector<24x64xf32>
    %16 = arith.mulf %12, %15 : vector<24x64xf32>
    %17 = math.erf %16 : vector<24x64xf32>
    %cst_13 = arith.constant 1.000000e+00 : f32
    %18 = vector.broadcast %cst_13 : f32 to vector<24x64xf32>
    %19 = arith.addf %18, %17 : vector<24x64xf32>
    %20 = arith.mulf %14, %19 : vector<24x64xf32>
    %c0_14 = arith.constant 0 : index
    %c0_15 = arith.constant 0 : index
    %21 = vector.load %arg6[%c0_14, %c0_15] : memref<64x128xf32, #tpu.memory_space<vmem>>, vector<64x128xf32>
    %cst_16 = arith.constant dense<0.000000e+00> : vector<24x128xf32>
    %22 = tpu.matmul %20, %21, %cst_16 {dimension_numbers = #tpu.dot_dimension_numbers<[1], [0], [0], [1], [0, 0, 1, 1], [], []>} : vector<24x64xf32>, vector<64x128xf32>, vector<24x128xf32> -> vector<24x128xf32>
    %c0_17 = arith.constant 0 : index
    %c0_18 = arith.constant 0 : index
    %23 = vector.load %arg7[%c0_17, %c0_18] : memref<1x128xf32, #tpu.memory_space<vmem>>, vector<1x128xf32>
    %24 = vector.broadcast %23 : vector<1x128xf32> to vector<24x128xf32>
    %25 = arith.addf %22, %24 : vector<24x128xf32>
    %c0_19 = arith.constant 0 : index
    %c0_20 = arith.constant 0 : index
    %26 = vector.load %arg8[%c0_19, %c0_20] : memref<24x128xf32, #tpu.memory_space<vmem>>, vector<24x128xf32>
    tpu.vector_store %arg8[%c0_19, %c0_20], %25 {strides = array<i32>} : memref<24x128xf32, #tpu.memory_space<vmem>>, vector<24x128xf32>,
    return
  }
  func.func @transform_0(%arg0: i32) -> (i32, i32) {
    %c0_i32 = arith.constant 0 : i32
    %c0_i32_0 = arith.constant 0 : i32
    return %arg0, %c0_i32 : i32, i32
  }
  func.func @transform_1(%arg0: i32) -> (i32, i32) {
    %c0_i32 = arith.constant 0 : i32
    %c0_i32_0 = arith.constant 0 : i32
    %c0_i32_1 = arith.constant 0 : i32
    return %c0_i32, %c0_i32_0 : i32, i32
  }
  func.func @transform_2(%arg0: i32) -> (i32, i32) {
    %c0_i32 = arith.constant 0 : i32
    %c0_i32_0 = arith.constant 0 : i32
    %c0_i32_1 = arith.constant 0 : i32
    return %c0_i32, %c0_i32_0 : i32, i32
  }
  func.func @transform_3(%arg0: i32) -> (i32, i32) {
    %c0_i32 = arith.constant 0 : i32
    %c0_i32_0 = arith.constant 0 : i32
    %c0_i32_1 = arith.constant 0 : i32
    return %c0_i32, %c0_i32_0 : i32, i32
  }
  func.func @transform_4(%arg0: i32) -> (i32, i32) {
    %c0_i32 = arith.constant 0 : i32
    %c0_i32_0 = arith.constant 0 : i32
    %c0_i32_1 = arith.constant 0 : i32
    return %c0_i32, %c0_i32_0 : i32, i32
  }
  func.func @transform_5(%arg0: i32) -> (i32, i32) {
    %c0_i32 = arith.constant 0 : i32
    %c0_i32_0 = arith.constant 0 : i32
    %c0_i32_1 = arith.constant 0 : i32
    return %c0_i32, %c0_i32_0 : i32, i32
  }
  func.func @transform_6(%arg0: i32) -> (i32, i32) {
    %c0_i32 = arith.constant 0 : i32
    %c0_i32_0 = arith.constant 0 : i32
    %c0_i32_1 = arith.constant 0 : i32
    return %c0_i32, %c0_i32_0 : i32, i32
  }
  func.func @transform_7(%arg0: i32) -> (i32, i32) {
    %c0_i32 = arith.constant 0 : i32
    %c0_i32_0 = arith.constant 0 : i32
    return %arg0, %c0_i32 : i32, i32
  }
}

</mosaic_0001>

<bundles_post_ra>
// kernel: tpu_custom_call.1
= control target key start
LH: loop header
LB: loop body
LE: loop exit
PB: predicated region body
PF: predicated region fallthrough
CT: control target
= control target key end

     0   :  { %12 = vsyncpa [#allocation3], 0  ;;  %s1756_s0 = inlined_call_operand.vmem [shape: f32[20,8], index: 0, kind: input, shape index: {}]   ;;  %s1757_s1 = inlined_call_operand.vmem [shape: f32[8,64], index: 1, kind: input, shape index: {}]   ;;  %s1758_s2 = inlined_call_operand.hbm [shape: f32[64,64], index: 2, kind: input, shape index: {}]   ;;  %s1759_s3 = inlined_call_operand.hbm [shape: f32[64,64], index: 3, kind: input, shape index: {}]   ;;  %s1760_s4 = inlined_call_operand.vmem [shape: f32[1,64], index: 4, kind: input, shape index: {}]   ;;  %s1761_s5 = inlined_call_operand.hbm [shape: f32[64,128], index: 5, kind: input, shape index: {}]   ;;  %s1762_s6 = inlined_call_operand.vmem [shape: f32[1,128], index: 6, kind: input, shape index: {}]   ;;  %s1763_s7 = inlined_call_operand.hbm [shape: f32[20,128], index: 7, kind: output, shape index: {}]  }
   0x1   :  { %13 = vsyncpa [#allocation6], 0 }
   0x2   :  { %14 = vsyncpa [#allocation4], 0  ;;  %s1435_s24 = smov [#allocation5]   ;;  %s1436_s26 = smov [#allocation2]  }
   0x3   :  { %s36_s25 = sshll.u32 %s1435_s24, 4  ;;  %s24_s27 = sshll.u32 %s1436_s26, 4  ;;  %s37_s25 = int_to_ptr.vmem [resolvable:$true] %s36_s25  ;;  %s25_s27 = int_to_ptr.vmem [resolvable:$true] %s24_s27 }
   0x4   :  { %s1357_s28 = scalar_lea.vmem %s37_s25, 1024  ;;  %p1362_p1 = scmp.lt.s32.totalorder %s37_s25, %s37_s25 }
   0x5   :  { %p1358_p0 = scmp.ne.s32.totalorder %s37_s25, %s1357_s28  ;;  %p1363_p2 = scmp.lt.s32.totalorder %s1357_s28, %s1357_s28 }
   0x7   :  { %p1364_p3 = por %p1363_p2, %p1362_p1 }
   0x9   :  { %p1365_p4 = pnand %p1364_p3, %p1358_p0 }
   0xb   :  { %1368 = shalt.err (!%p1365_p4)
}
   0xc   :  { %s1437_s29 = smov 128   ;;  %s1438_s30 = smov 8  }
   0xd   :  { %42 = dma.hbm_to_vmem [thread:$0]  %s1759_s3, 1024, %s37_s25, [#allocation6], %s1437_s29, %s1437_s29, %s1438_s30  }
   0xe   :  { %s1377_s10 = scalar_lea.vmem %s25_s27, 1024  ;;  %p1382_p6 = scmp.lt.s32.totalorder %s25_s27, %s25_s27 }
   0xf   :  { %p1378_p5 = scmp.ne.s32.totalorder %s25_s27, %s1377_s10  ;;  %p1383_p7 = scmp.lt.s32.totalorder %s1377_s10, %s1377_s10 }
  0x11   :  { %p1384_p8 = por %p1383_p7, %p1382_p6 }
  0x13   :  { %p1385_p9 = pnand %p1384_p8, %p1378_p5 }
  0x15   :  { %1388 = shalt.err (!%p1385_p9)
}
  0x16   :  { %30 = dma.hbm_to_vmem [thread:$0]  %s1758_s2, 1024, %s25_s27, [#allocation3], %s1437_s29, %s1437_s29, %s1438_s30  }
  0x17   :  { %s1439_s13 = smov [#allocation7]  }
  0x18   :  { %s50_s14 = sshll.u32 %s1439_s13, 4  ;;  %s51_s14 = int_to_ptr.vmem [resolvable:$true] %s50_s14 }
  0x19   :  { %s1397_s15 = scalar_lea.vmem %s51_s14, 1024  ;;  %p1402_p11 = scmp.lt.s32.totalorder %s51_s14, %s51_s14 }
  0x1a   :  { %p1398_p10 = scmp.ne.s32.totalorder %s51_s14, %s1397_s15  ;;  %p1403_p12 = scmp.lt.s32.totalorder %s1397_s15, %s1397_s15 }
  0x1c   :  { %p1404_p13 = por %p1403_p12, %p1402_p11 }
  0x1e   :  { %p1405_p0 = pnand %p1404_p13, %p1398_p10 }
  0x20   :  { %1408 = shalt.err (!%p1405_p0)
}
  0x21   :  { %56 = dma.hbm_to_vmem [thread:$0]  %s1761_s5, 1024, %s51_s14, [#allocation6], %s1437_s29, %s1437_s29, %s1438_s30  }
  0x22   :  { %1429 = dma.done.wait [#allocation3], 1024  }
  0x23   :  { %1430 = vsyncadd [#allocation3], 4294966272 }
  0x24   :  { %1431 = dma.done.wait [#allocation6], 2048  }
  0x25   :  { %1432 = vsyncadd [#allocation6], 4294965248  ;;  %v1440_v0 = vmov 0.0   ;;  %vm1441_vm0 = vmmov 0   ;;  %vm72_vm1 = vcmask 64512   ;;  %v71_v1 = vld [vmem:[%s1757_s1] sm:$0xff] }
  0x26   :  { %1203 = vmatprep.subr.mxu0 %v1440_v0  ;;  %1205 = vmatprep.mubr.msk.f32.mxu0 %vm1441_vm0, %v1440_v0  ;;  %v68_v2 = vld [vmem:[%s1756_s0] sm:$0xff]  ;;  %v69_v3 = vld [vmem:[%s1756_s0 + $0x8] sm:$0xff]  ;;  %v70_v4 = vld [vmem:[%s1756_s0 + $0x10] sm:$0xff]  ;;  %v1442_v47 = vmov 683565275   ;;  %s1448_s24 = smov [#allocation8]  }
  0x27   :  { %1214 = vmatprep.subr.mxu1 %v1440_v0  ;;  %1230 = vmatprep.mubr.msk.f32.mxu1 %vm1441_vm0, %v1440_v0  ;;  %v798_v5 = vld [vmem:[#allocation5 + $0x38] sm:$0xff]  ;;  %v797_v7 = vld [vmem:[#allocation5 + $0x30] sm:$0xff]  ;;  %v796_v9 = vld [vmem:[#allocation5 + $0x28] sm:$0xff]  ;;  %v1443_v49 = vmov 2475754826   ;;  %s1115_s25 = sshll.u32 %s1448_s24, 4  ;;  %s1116_s25 = int_to_ptr.vmem [resolvable:$true] %s1115_s25 }
  0x28   :  { %1204 = vmatpush3.msra.mxu0 %v71_v1  ;;  %v478_v6 = vld [vmem:[#allocation2 + $0x38] sm:$0xff]  ;;  %1215 = vmatpush3.msra.mxu1 %v798_v5  ;;  %v477_v8 = vld [vmem:[#allocation2 + $0x30] sm:$0xff]  ;;  %v476_v10 = vld [vmem:[#allocation2 + $0x28] sm:$0xff]  ;;  %v1444_v52 = vmov 2131351028   ;;  %s1409_s26 = scalar_lea.vmem %s1116_s25, 384  ;;  %p1414_p2 = scmp.lt.s32.totalorder %s1116_s25, %s1116_s25 }
  0x29   :  { %1206 = vmatmul.mubr.msk.f32.vlgmr.msra.gmra.mxu0 %vm72_vm1, %v68_v2  ;;  %1239 = vmatprep.subr.mxu0 %v1440_v0  ;;  %v795_v11 = vld [vmem:[#allocation5 + $0x20] sm:$0xff]  ;;  %v794_v13 = vld [vmem:[#allocation5 + $0x18] sm:$0xff]  ;;  %v793_v15 = vld [vmem:[#allocation5 + $0x10] sm:$0xff]  ;;  %v1445_v54 = vmov 2102212464   ;;  %p1410_p1 = scmp.ne.s32.totalorder %s1116_s25, %s1409_s26  ;;  %p1415_p3 = scmp.lt.s32.totalorder %s1409_s26, %s1409_s26 }
  0x2a   :  { %1208 = vmatprep.mubr.msk.f32.mxu0 %vm1441_vm0, %v1440_v0  ;;  %1240 = vmatpush3.msra.mxu0 %v478_v6  ;;  %v475_v12 = vld [vmem:[#allocation2 + $0x20] sm:$0xff]  ;;  %v474_v14 = vld [vmem:[#allocation2 + $0x18] sm:$0xff]  ;;  %v473_v16 = vld [vmem:[#allocation2 + $0x10] sm:$0xff]  ;;  %v1446_v56 = vmov 920167782  }
  0x2b   :  { %1216 = vmatprep.subr.mxu1 %v1440_v0  ;;  %1241 = vmatprep.subr.mxu0 %v1440_v0  ;;  %v792_v17 = vld [vmem:[#allocation5 + $0x8] sm:$0xff]  ;;  %v791_v19 = vld [vmem:[#allocation5] sm:$0xff]  ;;  %v1447_v63 = vmov 1326507024   ;;  %p1416_p4 = por %p1415_p3, %p1414_p2 }
  0x2c   :  { %1217 = vmatpush3.msra.mxu1 %v797_v7  ;;  %1242 = vmatpush3.msra.mxu0 %v477_v8  ;;  %v472_v18 = vld [vmem:[#allocation2 + $0x8] sm:$0xff]  ;;  %v471_v20 = vld [vmem:[#allocation2] sm:$0xff] }
  0x2d   :  { %1209 = vmatmul.mubr.msk.f32.gmra.mxu0 %vm72_vm1, %v69_v3  ;;  %1218 = vmatprep.subr.mxu1 %v1440_v0  ;;  %p1417_p5 = pnand %p1416_p4, %p1410_p1 }
  0x2e   :  { %1211 = vmatprep.mubr.msk.f32.mxu0 %vm1441_vm0, %v1440_v0  ;;  %1243 = vmatprep.subr.mxu0 %v1440_v0 }
  0x2f   :  { %1219 = vmatpush3.msra.mxu1 %v796_v9  ;;  %1244 = vmatpush3.msra.mxu0 %v476_v10 }
  0x30   :  { %1220 = vmatprep.subr.mxu1 %v1440_v0  ;;  %1245 = vmatprep.subr.mxu0 %v1440_v0 }
  0x31   :  { %1212 = vmatmul.mubr.msk.f32.gmra.mxu0 %vm72_vm1, %v70_v4  ;;  %1221 = vmatpush3.msra.mxu1 %v795_v11 }
  0x32   :  { %1255 = vmatprep.mubr.msk.f32.mxu0 %vm1441_vm0, %v1440_v0  ;;  %1246 = vmatpush3.msra.mxu0 %v475_v12 }
  0x33   :  { %1222 = vmatprep.subr.mxu1 %v1440_v0  ;;  %1247 = vmatprep.subr.mxu0 %v1440_v0 }
  0x34   :  { %1223 = vmatpush3.msra.mxu1 %v794_v13  ;;  %1248 = vmatpush3.msra.mxu0 %v474_v14 }
  0x35   :  { %1224 = vmatprep.subr.mxu1 %v1440_v0  ;;  %1249 = vmatprep.subr.mxu0 %v1440_v0 }
  0x36   :  { %1225 = vmatpush3.msra.mxu1 %v793_v15  ;;  %1250 = vmatpush3.msra.mxu0 %v473_v16 }
  0x37   :  { %1226 = vmatprep.subr.mxu1 %v1440_v0  ;;  %1251 = vmatprep.subr.mxu0 %v1440_v0 }
  0x38   :  { %1227 = vmatpush3.msra.mxu1 %v792_v17  ;;  %1252 = vmatpush3.msra.mxu0 %v472_v18 }
  0x39   :  { %1228 = vmatprep.subr.mxu1 %v1440_v0  ;;  %1253 = vmatprep.subr.mxu0 %v1440_v0 }
  0x3a   :  { %1229 = vmatpush3.msra.mxu1 %v791_v19  ;;  %1254 = vmatpush3.msra.mxu0 %v471_v20 }
  0x3b   :  { %1264 = vmatprep.subr.mxu0 %v1440_v0  ;;  %1289 = vmatprep.subr.mxu1 %v1440_v0 }
  0xe9   :  { %v1548_v21 = vpop.f32.mrf.mxu0 }
  0xea   :  { %v162_v22 = vand.u32 2147483647, %v1548_v21  ;;  %v165_v23 = vand.u32 2139095040, %v1548_v21 }
  0xeb   :  { %v1207_v24 = vpop.f32.mrf.mxu0 }
  0xec   :  { %v166_v25 = vshrl.u32 %v165_v23, 23  ;;  %v169_v26 = vand.u32 8388607, %v162_v22 }
  0xed   :  { %v1554_v27 = vpop.f32.mrf.mxu0 }
  0xee   :  { %v1131_v28 = vadd.s32 4294967169, %v166_v25  ;;  %v265_v29 = vand.u32 2147483647, %v1554_v27  ;;  %v268_v30 = vand.u32 2139095040, %v1554_v27  ;;  %v170_v33 = vor.u32 8388608, %v169_v26 }
  0xef   :  { %v1210_v31 = vpop.f32.mrf.mxu0 }
  0xf0   :  { %v172_v32 = vadd.s32 1, %v1131_v28  ;;  %v269_v34 = vshrl.u32 %v268_v30, 23  ;;  %v272_v35 = vand.u32 8388607, %v265_v29  ;;  %v1563_v43 = vshll.u32 %v170_v33, 8 }
  0xf1   :  { %v1560_v36 = vpop.f32.mrf.mxu0 }
  0xf2   :  { %vm173_vm2 = vcmp.gt.s32.totalorder %v172_v32, 0  ;;  %v1135_v38 = vadd.s32 4294967169, %v269_v34  ;;  %v371_v39 = vand.u32 2139095040, %v1560_v36  ;;  %v273_v44 = vor.u32 8388608, %v272_v35 }
  0xf3   :  { %v174_v37 = vsel %vm173_vm2, %v172_v32, 0  ;;  %v1213_v40 = vpop.f32.mrf.mxu0  ;;  %v368_v24 = vand.u32 2147483647, %v1560_v36 }
  0xf4   :  { %v175_v41 = vshrl.u32 %v174_v37, 5  ;;  %v176_v42 = vand.u32 31, %v174_v37  ;;  %v275_v45 = vadd.s32 1, %v1135_v38  ;;  %v372_v51 = vshrl.u32 %v371_v39, 23 }
  0xf5   :  { %v313_v33 = vshll.u32 %v273_v44, 8 }
  0xf6   :  { %v177_v46 = vsub.s32 32, %v176_v42  ;;  %v179_v48 = vshll.u32 %v1442_v47, %v176_v42  ;;  %v182_v50 = vshll.u32 %v1443_v49, %v176_v42  ;;  %v185_v53 = vshll.u32 %v1444_v52, %v176_v42 }
  0xf7   :  { %v188_v55 = vshll.u32 %v1445_v54, %v176_v42  ;;  %v191_v57 = vshll.u32 %v1446_v56, %v176_v42  ;;  %vm194_vm3 = vcmp.lt.s32.totalorder %v175_v41, 1  ;;  %vm195_vm4 = vcmp.lt.s32.totalorder %v175_v41, 2 }
  0xf8   :  { %v180_v58 = vshrl.u32 %v1443_v49, %v177_v46  ;;  %v183_v59 = vshrl.u32 %v1444_v52, %v177_v46  ;;  %v186_v60 = vshrl.u32 %v1445_v54, %v177_v46  ;;  %v178_v61 = vshrl.u32 %v1442_v47, %v177_v46 }
  0xf9   :  { %v189_v62 = vshrl.u32 %v1446_v56, %v177_v46  ;;  %v192_v1 = vshrl.u32 %v1447_v63, %v177_v46  ;;  %vm196_vm5 = vcmp.lt.s32.totalorder %v175_v41, 3  ;;  %vm276_vm6 = vcmp.gt.s32.totalorder %v275_v45, 0 }
  0xfa   :  { %v181_v2 = vor.u32 %v180_v58, %v179_v48  ;;  %v184_v3 = vor.u32 %v183_v59, %v182_v50  ;;  %v187_v4 = vor.u32 %v186_v60, %v185_v53  ;;  %vm197_vm7 = vcmp.lt.s32.totalorder %v175_v41, 4 }
  0xfb   :  { %v190_v5 = vor.u32 %v189_v62, %v188_v55  ;;  %v193_v6 = vor.u32 %v192_v1, %v191_v57  ;;  %v277_v7 = vsel %vm276_vm6, %v275_v45, 0  ;;  %v1139_v34 = vadd.s32 4294967169, %v372_v51 }
  0xfc   :  { %v198_v8 = vsel %vm194_vm3, %v178_v61, %v181_v2  ;;  %v199_v9 = vsel %vm197_vm7, %v187_v4, 2102212464  ;;  %v202_v10 = vsel %vm194_vm3, %v181_v2, %v184_v3  ;;  %v206_v11 = vsel %vm194_vm3, %v184_v3, %v187_v4 }
  0xfd   :  { %v200_v12 = vsel %vm196_vm5, %v184_v3, %v199_v9  ;;  %v203_v13 = vsel %vm197_vm7, %v190_v5, 920167782  ;;  %v207_v14 = vsel %vm197_vm7, %v193_v6, 1326507024  ;;  %v278_v15 = vshrl.u32 %v277_v7, 5 }
  0xfe   :  { %v201_v16 = vsel %vm195_vm4, %v198_v8, %v200_v12  ;;  %v204_v17 = vsel %vm196_vm5, %v187_v4, %v203_v13  ;;  %v208_v18 = vsel %vm196_vm5, %v190_v5, %v207_v14  ;;  %v279_v19 = vand.u32 31, %v277_v7 }
  0xff   :  { %v205_v20 = vsel %vm195_vm4, %v202_v10, %v204_v17  ;;  %v209_v23 = vsel %vm195_vm4, %v206_v11, %v208_v18  ;;  %v217_v31 = vmul.u32 %v1563_v43, %v201_v16  ;;  %vm297_vm8 = vcmp.lt.s32.totalorder %v278_v15, 1 }
 0x100   :  { %v1587_v25 = vmul.u32.u64.low %v1563_v43, %v209_v23  ;;  %v1588_v26 = vmul.u32.u64.high %v1563_v43, %v209_v23, %v1587_v25  ;;  %v1591_v28 = vmul.u32.u64.low %v1563_v43, %v205_v20  ;;  %v1592_v30 = vmul.u32.u64.high %v1563_v43, %v205_v20, %v1591_v28 }
 0x101   :  { %v280_v32 = vsub.s32 32, %v279_v19  ;;  %v282_v35 = vshll.u32 %v1442_v47, %v279_v19  ;;  %v285_v37 = vshll.u32 %v1443_v49, %v279_v19  ;;  %v288_v38 = vshll.u32 %v1444_v52, %v279_v19 }
 0x102   :  { %v291_v42 = vshll.u32 %v1445_v54, %v279_v19  ;;  %vm219_vm9 = vc.u32 %v1588_v26, %v1591_v28  ;;  %v220_v43 = vadd.s32 1, %v1592_v30  ;;  %v294_v45 = vshll.u32 %v1446_v56, %v279_v19 }
 0x103   :  { %v283_v39 = vshrl.u32 %v1443_v49, %v280_v32  ;;  %v286_v40 = vshrl.u32 %v1444_v52, %v280_v32  ;;  %v289_v41 = vshrl.u32 %v1445_v54, %v280_v32  ;;  %v292_v44 = vshrl.u32 %v1446_v56, %v280_v32 }
 0x104   :  { %v295_v51 = vshrl.u32 %v1447_v63, %v280_v32  ;;  %v221_v53 = vsel %vm219_vm9, %v220_v43, %v1592_v30  ;;  %vm298_vm10 = vcmp.lt.s32.totalorder %v278_v15, 2  ;;  %vm300_vm11 = vcmp.lt.s32.totalorder %v278_v15, 4 }
 0x105   :  { %v284_v46 = vor.u32 %v283_v39, %v282_v35  ;;  %v287_v48 = vor.u32 %v286_v40, %v285_v37  ;;  %v290_v50 = vor.u32 %v289_v41, %v288_v38  ;;  %v293_v55 = vor.u32 %v292_v44, %v291_v42 }
 0x106   :  { %v222_v57 = vadd.s32 %v221_v53, %v217_v31  ;;  %v281_v58 = vshrl.u32 %v1442_v47, %v280_v32  ;;  %v296_v59 = vor.u32 %v295_v51, %v294_v45  ;;  %vm299_vm12 = vcmp.lt.s32.totalorder %v278_v15, 3 }
 0x107   :  { %v302_v60 = vsel %vm300_vm11, %v290_v50, 2102212464  ;;  %v305_v61 = vsel %vm297_vm8, %v284_v46, %v287_v48  ;;  %v306_v62 = vsel %vm300_vm11, %v293_v55, 920167782  ;;  %v309_v1 = vsel %vm297_vm8, %v287_v48, %v290_v50 }
 0x108   :  { %v223_v2 = vadd.s32 536870912, %v222_v57  ;;  %v301_v3 = vsel %vm297_vm8, %v281_v58, %v284_v46  ;;  %v307_v4 = vsel %vm299_vm12, %v290_v50, %v306_v62  ;;  %v310_v5 = vsel %vm300_vm11, %v296_v59, 1326507024 }
 0x109   :  { %v303_v6 = vsel %vm299_vm12, %v287_v48, %v302_v60  ;;  %v308_v7 = vsel %vm298_vm10, %v305_v61, %v307_v4  ;;  %v311_v8 = vsel %vm299_vm12, %v293_v55, %v310_v5  ;;  %v378_v9 = vadd.s32 1, %v1139_v34 }
 0x10a   :  { %v1615_v10 = vshrl.u32 %v223_v2, 30  ;;  %v312_v11 = vsel %vm298_vm10, %v309_v1, %v311_v8  ;;  %v1618_v12 = vmul.u32.u64.low %v313_v33, %v308_v7  ;;  %v1619_v13 = vmul.u32.u64.high %v313_v33, %v308_v7, %v1618_v12 }
 0x10b   :  { %v1622_v14 = vmul.u32.u64.low %v313_v33, %v312_v11  ;;  %v1623_v16 = vmul.u32.u64.high %v313_v33, %v312_v11, %v1622_v14  ;;  %vm379_vm13 = vcmp.gt.s32.totalorder %v378_v9, 0  ;;  %v304_v18 = vsel %vm298_vm10, %v301_v3, %v303_v6 }
 0x10c   :  { %v225_v17 = vshll.u32 %v1615_v10, 30  ;;  %v375_v19 = vand.u32 8388607, %v368_v24  ;;  %v380_v20 = vsel %vm379_vm13, %v378_v9, 0  ;;  %v323_v30 = vadd.s32 1, %v1619_v13 }
 0x10d   :  { %v382_v23 = vand.u32 31, %v380_v20  ;;  %v320_v31 = vmul.u32 %v313_v33, %v304_v18  ;;  %vm322_vm14 = vc.u32 %v1623_v16, %v1618_v12  ;;  %v381_v15 = vshrl.u32 %v380_v20, 5 }
 0x10e   :  { %v226_v25 = vsub.s32 %v222_v57, %v225_v17  ;;  %v324_v35 = vsel %vm322_vm14, %v323_v30, %v1619_v13  ;;  %v376_v37 = vor.u32 8388608, %v375_v19  ;;  %v218_v50 = vadd.s32 %v1591_v28, %v1588_v26 }
 0x10f   :  { %v383_v32 = vsub.s32 32, %v382_v23  ;;  %v325_v38 = vadd.s32 %v324_v35, %v320_v31  ;;  %v385_v39 = vshll.u32 %v1442_v47, %v382_v23  ;;  %v391_v43 = vshll.u32 %v1444_v52, %v382_v23 }
 0x110   :  { %v228_v34 = vsub.s32 0, %v226_v25  ;;  %v388_v45 = vshll.u32 %v1443_v49, %v382_v23  ;;  %v394_v46 = vshll.u32 %v1445_v54, %v382_v23  ;;  %vm400_vm15 = vcmp.lt.s32.totalorder %v381_v15, 1 }
 0x111   :  { %v386_v40 = vshrl.u32 %v1443_v49, %v383_v32  ;;  %v389_v42 = vshrl.u32 %v1444_v52, %v383_v32  ;;  %v392_v33 = vshrl.u32 %v1445_v54, %v383_v32  ;;  %v326_v44 = vadd.s32 536870912, %v325_v38 }
 0x112   :  { %v1132_v41 = vmin.u32 %v228_v34, %v226_v25  ;;  %v395_v48 = vshrl.u32 %v1446_v56, %v383_v32  ;;  %v398_v52 = vshrl.u32 %v1447_v63, %v383_v32  ;;  %v384_v61 = vshrl.u32 %v1442_v47, %v383_v32 }
 0x113   :  { %v387_v53 = vor.u32 %v386_v40, %v385_v39  ;;  %v393_v55 = vor.u32 %v392_v33, %v391_v43  ;;  %v1643_v57 = vshrl.u32 %v326_v44, 30  ;;  %v390_v58 = vor.u32 %v389_v42, %v388_v45 }
 0x114   :  { %v230_v51 = vclz %v1132_v41  ;;  %v396_v59 = vor.u32 %v395_v48, %v394_v46  ;;  %v397_v49 = vshll.u32 %v1446_v56, %v382_v23  ;;  %v416_v54 = vshll.u32 %v376_v37, 8 }
 0x115   :  { %v328_v62 = vshll.u32 %v1643_v57, 30  ;;  %vm401_vm1 = vcmp.lt.s32.totalorder %v381_v15, 2  ;;  %vm403_vm2 = vcmp.lt.s32.totalorder %v381_v15, 4  ;;  %vm402_vm4 = vcmp.lt.s32.totalorder %v381_v15, 3 }
 0x116   :  { %v1133_v60 = vadd.s32 4294967294, %v230_v51  ;;  %v399_v26 = vor.u32 %v398_v52, %v397_v49  ;;  %v405_v28 = vsel %vm403_vm2, %v393_v55, 2102212464  ;;  %v409_v1 = vsel %vm403_vm2, %v396_v59, 920167782 }
 0x117   :  { %v329_v3 = vsub.s32 %v325_v38, %v328_v62  ;;  %v408_v63 = vsel %vm400_vm15, %v387_v53, %v390_v58  ;;  %v404_v56 = vsel %vm400_vm15, %v384_v61, %v387_v53  ;;  %v406_v5 = vsel %vm402_vm4, %v390_v58, %v405_v28 }
 0x118   :  { %vm1134_vm3 = vcmp.lt.s32.totalorder %v1133_v60, 0  ;;  %v410_v8 = vsel %vm402_vm4, %v393_v55, %v409_v1  ;;  %v412_v9 = vsel %vm400_vm15, %v390_v58, %v393_v55  ;;  %v413_v17 = vsel %vm403_vm2, %v399_v26, 1326507024 }
 0x119   :  { %v233_v2 = vsel %vm1134_vm3, 0, %v1133_v60  ;;  %v331_v7 = vsub.s32 0, %v329_v3  ;;  %v411_v14 = vsel %vm401_vm1, %v408_v63, %v410_v8  ;;  %v414_v19 = vsel %vm402_vm4, %v396_v59, %v413_v17 }
 0x11a   :  { %v234_v47 = vsub.s32 32, %v233_v2  ;;  %v238_v4 = vsub.s32 4294967266, %v233_v2  ;;  %v235_v6 = vshll.u32 %v226_v25, %v233_v2  ;;  %v415_v25 = vsel %vm401_vm1, %v412_v9, %v414_v19 }
 0x11b   :  { %v1136_v18 = vmin.u32 %v331_v7, %v329_v3  ;;  %v1656_v20 = vmul.u32.u64.low %v416_v54, %v411_v14  ;;  %v1657_v23 = vmul.u32.u64.high %v416_v54, %v411_v14, %v1656_v20  ;;  %v407_v38 = vsel %vm401_vm1, %v404_v56, %v406_v5 }
 0x11c   :  { %v236_v11 = vshrl.u32 %v218_v50, %v234_v47  ;;  %v239_v13 = vadd.s32 127, %v238_v4  ;;  %v1661_v34 = vmul.u32.u64.low %v416_v54, %v415_v25  ;;  %v1662_v35 = vmul.u32.u64.high %v416_v54, %v415_v25, %v1661_v34 }
 0x11d   :  { %v333_v32 = vclz %v1136_v18  ;;  %v426_v40 = vadd.s32 1, %v1657_v23  ;;  %v423_v43 = vmul.u32 %v416_v54, %v407_v38  ;;  %v248_v44 = vsub.s32 4, %v1615_v10 }
 0x11e   :  { %v237_v30 = vor.u32 %v236_v11, %v235_v6  ;;  %v240_v31 = vshll.u32 %v239_v13, 23  ;;  %vm425_vm6 = vc.u32 %v1662_v35, %v1656_v20  ;;  %v321_v15 = vadd.s32 %v1618_v12, %v1623_v16 }
 0x11f   :  { %v1137_v39 = vadd.s32 4294967294, %v333_v32  ;;  %v427_v46 = vsel %vm425_vm6, %v426_v40, %v1657_v23  ;;  %vm164_vm7 = vcmp.lt.s32.totalorder %v1548_v21, 0  ;;  %vm163_vm8 = vcmp.le.f32.partialorder %v162_v22, 0.7853982 }
 0x120   :  { %v241_v37 = vor.u32 4788187, %v240_v31  ;;  %v244_v42 = vcvt.s32.f32 %v237_v30  ;;  %v428_v51 = vadd.s32 %v427_v46, %v423_v43  ;;  %v249_v61 = vsel %vm164_vm7, %v248_v44, %v1615_v10 }
 0x121   :  { %vm1138_vm5 = vcmp.lt.s32.totalorder %v1137_v39, 0  ;;  %v251_v28 = vsel %vm163_vm8, 0, %v249_v61  ;;  %vm267_vm9 = vcmp.lt.s32.totalorder %v1554_v27, 0  ;;  %vm266_vm10 = vcmp.le.f32.partialorder %v265_v29, 0.7853982 }
 0x122   :  { %v242_v41 = vand.u32 2147483647, %v241_v37  ;;  %v336_v45 = vsel %vm1138_vm5, 0, %v1137_v39  ;;  %v429_v52 = vadd.s32 536870912, %v428_v51  ;;  %v572_v10 = vadd.s32 3, %v251_v28 }
 0x123   :  { %v337_v48 = vsub.s32 32, %v336_v45  ;;  %v341_v50 = vsub.s32 4294967266, %v336_v45  ;;  %v338_v55 = vshll.u32 %v329_v3, %v336_v45  ;;  %v351_v3 = vsub.s32 4, %v1643_v57 }
 0x124   :  { %v245_v33 = vmul.f32 %v244_v42, %v242_v41  ;;  %v1677_v16 = vshrl.u32 %v429_v52, 30  ;;  %v255_v6 = vand.u32 3, %v251_v28  ;;  %v573_v13 = vand.u32 3, %v572_v10 }
 0x125   :  { %v339_v58 = vshrl.u32 %v321_v15, %v337_v48  ;;  %v342_v59 = vadd.s32 127, %v341_v50  ;;  %v352_v56 = vsel %vm267_vm9, %v351_v3, %v1643_v57  ;;  %vm799_vm12 = vcmask 523264  }
 0x126   :  { %v246_v53 = vxor.u32 2147483648, %v245_v33  ;;  %v431_v26 = vshll.u32 %v1677_v16, 30  ;;  %v354_v11 = vsel %vm266_vm10, 0, %v352_v56  ;;  %vm256_vm11 = vcmp.lt.s32.totalorder %v255_v6, 2 }
 0x127   :  { %v340_v54 = vor.u32 %v339_v58, %v338_v55  ;;  %v343_v12 = vshll.u32 %v342_v59, 23  ;;  %vm257_vm14 = vcmp.eq.s32.totalorder %v255_v6, 0  ;;  %vm260_vm15 = vcmp.eq.s32.totalorder %v255_v6, 2 }
 0x128   :  { %v247_v60 = vsel %vm164_vm7, %v246_v53, %v245_v33  ;;  %v432_v22 = vsub.s32 %v428_v51, %v431_v26  ;;  %v676_v57 = vadd.s32 3, %v354_v11  ;;  %v424_v29 = vadd.s32 %v1656_v20, %v1662_v35 }
 0x129   :  { %v250_v49 = vsel %vm163_vm8, %v1548_v21, %v247_v60  ;;  %v344_v62 = vor.u32 4788187, %v343_v12  ;;  %v347_v2 = vcvt.s32.f32 %v340_v54  ;;  %vm574_vm1 = vcmp.lt.s32.totalorder %v573_v13, 2 }
 0x12a   :  { %1331 = vcosq.f32 %v250_v49  ;;  %v434_v47 = vsub.s32 0, %v432_v22  ;;  %vm578_vm2 = vcmp.eq.s32.totalorder %v573_v13, 2  ;;  %vm575_vm3 = vcmp.eq.s32.totalorder %v573_v13, 0 }
 0x12b   :  { %1333 = vsinq.f32 %v250_v49  ;;  %v345_v1 = vand.u32 2147483647, %v344_v62  ;;  %vm254_vm4 = vweird.f32 %v1548_v21  ;;  %v677_v46 = vand.u32 3, %v676_v57  ;;  %v1007_v57 = vld [vmem:[#allocation7 + $0x20] sm:$0xff] }
 0x12c   :  { %v1140_v5 = vmin.u32 %v434_v47, %v432_v22  ;;  %v358_v21 = vand.u32 3, %v354_v11  ;;  %vm357_vm5 = vweird.f32 %v1554_v27  ;;  %vm370_vm6 = vcmp.lt.s32.totalorder %v1560_v36, 0 }
 0x12d   :  { %v348_v63 = vmul.f32 %v347_v2, %v345_v1  ;;  %vm678_vm7 = vcmp.lt.s32.totalorder %v677_v46, 2  ;;  %vm679_vm8 = vcmp.eq.s32.totalorder %v677_v46, 0  ;;  %v454_v61 = vsub.s32 4, %v1677_v16 }
 0x12e   :  { %v436_v8 = vclz %v1140_v5 }
 0x12f   :  { %v349_v4 = vxor.u32 2147483648, %v348_v63 }
 0x130   :  { %v1141_v14 = vadd.s32 4294967294, %v436_v8 }
 0x131   :  { %v350_v7 = vsel %vm267_vm9, %v349_v4, %v348_v63  ;;  %vm682_vm9 = vcmp.eq.s32.totalorder %v677_v46, 2 }
 0x132   :  { %v353_v9 = vsel %vm266_vm10, %v1554_v27, %v350_v7  ;;  %vm1142_vm13 = vcmp.lt.s32.totalorder %v1141_v14, 0  ;;  %vm363_vm10 = vcmp.eq.s32.totalorder %v358_v21, 2 }
 0x133   :  { %1335 = vcosq.f32 %v353_v9  ;;  %v439_v19 = vsel %vm1142_vm13, 0, %v1141_v14  ;;  %vm359_vm13 = vcmp.lt.s32.totalorder %v358_v21, 2  ;;  %v1010_v14 = vld [vmem:[#allocation7 + $0x38] sm:$0xff] }
 0x134   :  { %1337 = vsinq.f32 %v353_v9  ;;  %v440_v30 = vsub.s32 32, %v439_v19  ;;  %v444_v31 = vsub.s32 4294967266, %v439_v19  ;;  %v441_v32 = vshll.u32 %v432_v22, %v439_v19  ;;  %v1004_v19 = vld [vmem:[#allocation7 + $0x8] sm:$0xff] }
 0x136   :  { %v442_v38 = vshrl.u32 %v424_v29, %v440_v30  ;;  %v445_v39 = vadd.s32 127, %v444_v31  ;;  %v1005_v29 = vld [vmem:[#allocation7 + $0x10] sm:$0xff] }
 0x137   :  { %v1332_v17 = vpop.eup %1331 }
 0x138   :  { %v1334_v18 = vpop.eup %1333  ;;  %v261_v23 = vxor.u32 2147483648, %v1332_v17  ;;  %v443_v42 = vor.u32 %v442_v38, %v441_v32  ;;  %v446_v43 = vshll.u32 %v445_v39, 23 }
 0x139   :  { %v258_v25 = vxor.u32 2147483648, %v1334_v18 }
 0x13a   :  { %v262_v34 = vsel %vm260_vm15, %v261_v23, %v1334_v18  ;;  %v580_v37 = vsel %vm578_vm2, %v261_v23, %v1334_v18  ;;  %v447_v45 = vor.u32 4788187, %v446_v43  ;;  %v450_v48 = vcvt.s32.f32 %v443_v42  ;;  %v1006_v18 = vld [vmem:[#allocation7 + $0x18] sm:$0xff]  ;;  %v1003_v23 = vld [vmem:[#allocation7] sm:$0xff] }
 0x13b   :  { %v259_v40 = vsel %vm257_vm14, %v1332_v17, %v258_v25  ;;  %v577_v41 = vsel %vm575_vm3, %v1332_v17, %v258_v25  ;;  %vm369_vm14 = vcmp.le.f32.partialorder %v368_v24, 0.7853982  ;;  %v455_v24 = vsel %vm370_vm6, %v454_v61, %v1677_v16  ;;  %v1008_v17 = vld [vmem:[#allocation7 + $0x28] sm:$0xff]  ;;  %v1161_v25 = vld [vmem:[%s1760_s4] ss:$0 sm:$0xff] }
 0x13c   :  { %v263_v20 = vsel %vm256_vm11, %v259_v40, %v262_v34  ;;  %v581_v35 = vsel %vm574_vm1, %v577_v41, %v580_v37  ;;  %v448_v15 = vand.u32 2147483647, %v447_v45  ;;  %vm360_vm11 = vcmp.eq.s32.totalorder %v358_v21, 0 }
 0x13d   :  { %v264_v33 = vsel %vm254_vm4, nan, %v263_v20  ;;  %v582_v44 = vsel %vm254_vm4, nan, %v581_v35  ;;  %v457_v3 = vsel %vm369_vm14, 0, %v455_v24 }
 0x13e   :  { %1231 = vmatmul.mubr.msk.f32.vlgmr.msra.gmra.mxu1 %vm799_vm12, %v582_v44  ;;  %1256 = vmatmul.mubr.msk.f32.vlgmr.msra.gmra.mxu0 %vm799_vm12, %v264_v33  ;;  %v451_v53 = vmul.f32 %v450_v48, %v448_v15  ;;  %v780_v22 = vadd.s32 3, %v457_v3  ;;  %v461_v63 = vand.u32 3, %v457_v3 }
 0x13f   :  { %1233 = vmatprep.mubr.msk.f32.mxu1 %vm1441_vm0, %v1440_v0  ;;  %1258 = vmatprep.mubr.msk.f32.mxu0 %vm1441_vm0, %v1440_v0 }
 0x140   :  { %v1336_v50 = vpop.eup %1335  ;;  %v452_v59 = vxor.u32 2147483648, %v451_v53  ;;  %v781_v27 = vand.u32 3, %v780_v22  ;;  %vm466_vm1 = vcmp.eq.s32.totalorder %v461_v63, 2  ;;  %vm463_vm3 = vcmp.eq.s32.totalorder %v461_v63, 0  ;;  %1265 = vmatpush3.msra.mxu0 %v1010_v14  ;;  %1297 = vmatpush3.msra.mxu1 %v1010_v14 }
 0x141   :  { %v1338_v51 = vpop.eup %1337  ;;  %v364_v55 = vxor.u32 2147483648, %v1336_v50  ;;  %1266 = vmatprep.subr.mxu0 %v1440_v0  ;;  %1290 = vmatprep.subr.mxu1 %v1440_v0 }
 0x142   :  { %v361_v58 = vxor.u32 2147483648, %v1338_v51  ;;  %v453_v12 = vsel %vm370_vm6, %v452_v59, %v451_v53  ;;  %vm786_vm15 = vcmp.eq.s32.totalorder %v781_v27, 2  ;;  %vm783_vm2 = vcmp.eq.s32.totalorder %v781_v27, 0 }
 0x143   :  { %v684_v52 = vsel %vm682_vm9, %v364_v55, %v1338_v51  ;;  %v365_v60 = vsel %vm363_vm10, %v364_v55, %v1338_v51  ;;  %v456_v28 = vsel %vm369_vm14, %v1560_v36, %v453_v12  ;;  %vm782_vm4 = vcmp.lt.s32.totalorder %v781_v27, 2 }
 0x144   :  { %v681_v49 = vsel %vm679_vm8, %v1336_v50, %v361_v58  ;;  %v362_v54 = vsel %vm360_vm11, %v1336_v50, %v361_v58  ;;  %1339 = vcosq.f32 %v456_v28  ;;  %vm460_vm6 = vweird.f32 %v1560_v36  ;;  %v1009_v36 = vld [vmem:[#allocation7 + $0x30] sm:$0xff] }
 0x145   :  { %v685_v62 = vsel %vm678_vm7, %v681_v49, %v684_v52  ;;  %v366_v26 = vsel %vm359_vm13, %v362_v54, %v365_v60  ;;  %1341 = vsinq.f32 %v456_v28  ;;  %1267 = vmatpush3.msra.mxu0 %v1009_v36  ;;  %1298 = vmatpush3.msra.mxu1 %v1009_v36 }
 0x146   :  { %v686_v1 = vsel %vm357_vm5, nan, %v685_v62  ;;  %v367_v2 = vsel %vm357_vm5, nan, %v366_v26  ;;  %vm462_vm5 = vcmp.lt.s32.totalorder %v461_v63, 2  ;;  %1268 = vmatprep.subr.mxu0 %v1440_v0  ;;  %1291 = vmatprep.subr.mxu1 %v1440_v0  ;;  %v1162_v26 = vld [vmem:[%s1762_s6] ss:$0 sm:$0xff] }
 0x147   :  { %1234 = vmatmul.mubr.msk.f32.gmra.mxu1 %vm799_vm12, %v686_v1  ;;  %1259 = vmatmul.mubr.msk.f32.gmra.mxu0 %vm799_vm12, %v367_v2 }
 0x148   :  { %1236 = vmatprep.mubr.msk.f32.mxu1 %vm1441_vm0, %v1440_v0  ;;  %1261 = vmatprep.mubr.msk.f32.mxu0 %vm1441_vm0, %v1440_v0 }
 0x149   :  { %1269 = vmatpush3.msra.mxu0 %v1008_v17  ;;  %1299 = vmatpush3.msra.mxu1 %v1008_v17 }
 0x14a   :  { %1270 = vmatprep.subr.mxu0 %v1440_v0  ;;  %1292 = vmatprep.subr.mxu1 %v1440_v0 }
 0x14b   :  { %1271 = vmatpush3.msra.mxu0 %v1007_v57  ;;  %1300 = vmatpush3.msra.mxu1 %v1007_v57 }
 0x14c   :  { %1272 = vmatprep.subr.mxu0 %v1440_v0  ;;  %1293 = vmatprep.subr.mxu1 %v1440_v0 }
 0x14d   :  { %1273 = vmatpush3.msra.mxu0 %v1006_v18  ;;  %1301 = vmatpush3.msra.mxu1 %v1006_v18 }
 0x14e   :  { %1274 = vmatprep.subr.mxu0 %v1440_v0  ;;  %1294 = vmatprep.subr.mxu1 %v1440_v0 }
 0x14f   :  { %1275 = vmatpush3.msra.mxu0 %v1005_v29  ;;  %1302 = vmatpush3.msra.mxu1 %v1005_v29 }
 0x150   :  { %1276 = vmatprep.subr.mxu0 %v1440_v0  ;;  %1295 = vmatprep.subr.mxu1 %v1440_v0 }
 0x151   :  { %v1340_v47 = vpop.eup %1339  ;;  %1277 = vmatpush3.msra.mxu0 %v1004_v19  ;;  %1303 = vmatpush3.msra.mxu1 %v1004_v19 }
 0x152   :  { %v1342_v10 = vpop.eup %1341  ;;  %v467_v4 = vxor.u32 2147483648, %v1340_v47  ;;  %1278 = vmatprep.subr.mxu0 %v1440_v0  ;;  %1296 = vmatprep.subr.mxu1 %v1440_v0 }
 0x153   :  { %v464_v56 = vxor.u32 2147483648, %v1342_v10  ;;  %1279 = vmatpush3.msra.mxu0 %v1003_v23  ;;  %1304 = vmatpush3.msra.mxu1 %v1003_v23 }
 0x154   :  { %v788_v5 = vsel %vm786_vm15, %v467_v4, %v1342_v10  ;;  %v468_v16 = vsel %vm466_vm1, %v467_v4, %v1342_v10 }
 0x155   :  { %v785_v6 = vsel %vm783_vm2, %v1340_v47, %v464_v56  ;;  %v465_v7 = vsel %vm463_vm3, %v1340_v47, %v464_v56 }
 0x156   :  { %v789_v8 = vsel %vm782_vm4, %v785_v6, %v788_v5  ;;  %v469_v9 = vsel %vm462_vm5, %v465_v7, %v468_v16 }
 0x157   :  { %v790_v11 = vsel %vm460_vm6, nan, %v789_v8  ;;  %v470_v13 = vsel %vm460_vm6, nan, %v469_v9 }
 0x158   :  { %1237 = vmatmul.mubr.msk.f32.gmra.mxu1 %vm799_vm12, %v790_v11  ;;  %1262 = vmatmul.mubr.msk.f32.gmra.mxu0 %vm799_vm12, %v470_v13 }
 0x159   :  { %1280 = vmatprep.mubr.msk.f32.mxu0 %vm1441_vm0, %v1440_v0  ;;  %1283 = vmatprep.mubr.msk.f32.mxu1 %vm1441_vm0, %v1440_v0 }
 0x1fe   :  { %v875_v30 = vpop.f32.mrf.mxu1  ;;  %v964_v31 = vpop.f32.mrf.mxu0 }
 0x1ff   :  { %v965_v32 = vadd.f32 %v964_v31, %v875_v30 }
 0x200   :  { %v1232_v34 = vpop.f32.mrf.mxu1  ;;  %v1257_v37 = vpop.f32.mrf.mxu0 }
 0x201   :  { %v985_v38 = vadd.f32 %v1161_v25, %v965_v32 }
 0x203   :  { %v991_v39 = vmul.f32 0.70710677, %v985_v38  ;;  %v988_v45 = vmul.f32 0.5, %v985_v38 }
 0x205   :  { %1343 = verf.f32 %v991_v39 }
 0x207   :  { %v880_v40 = vpop.f32.mrf.mxu1  ;;  %v969_v41 = vpop.f32.mrf.mxu0 }
 0x208   :  { %v970_v20 = vadd.f32 %v969_v41, %v880_v40 }
 0x209   :  { %v1235_v35 = vpop.f32.mrf.mxu1  ;;  %v1260_v42 = vpop.f32.mrf.mxu0 }
 0x20a   :  { %v986_v43 = vadd.f32 %v1161_v25, %v970_v20 }
 0x20c   :  { %v992_v33 = vmul.f32 0.70710677, %v986_v43  ;;  %v989_v51 = vmul.f32 0.5, %v986_v43 }
 0x20e   :  { %1345 = verf.f32 %v992_v33 }
 0x212   :  { %v1344_v44 = vpop.eup %1343 }
 0x213   :  { %v997_v46 = vadd.f32 1.0, %v1344_v44 }
 0x215   :  { %v1000_v21 = vmul.f32 %v997_v46, %v988_v45 }
 0x217   :  { %1281 = vmatmul.mubr.msk.f32.vlgmr.msra.gmra.mxu0 %vm799_vm12, %v1000_v21 }
 0x218   :  { %v885_v48 = vpop.f32.mrf.mxu1  ;;  %v974_v50 = vpop.f32.mrf.mxu0 }
 0x219   :  { %v975_v55 = vadd.f32 %v974_v50, %v885_v48 }
 0x21a   :  { %v1238_v58 = vpop.f32.mrf.mxu1  ;;  %v1263_v59 = vpop.f32.mrf.mxu0 }
 0x21b   :  { %v1346_v15 = vpop.eup %1345  ;;  %v987_v60 = vadd.f32 %v1161_v25, %v975_v55 }
 0x21c   :  { %v998_v53 = vadd.f32 1.0, %v1346_v15 }
 0x21d   :  { %v993_v61 = vmul.f32 0.70710677, %v987_v60  ;;  %v990_v54 = vmul.f32 0.5, %v987_v60 }
 0x21e   :  { %v1001_v52 = vmul.f32 %v998_v53, %v989_v51 }
 0x21f   :  { %1347 = verf.f32 %v993_v61 }
 0x220   :  { %1284 = vmatmul.mubr.msk.f32.vlgmr.msra.gmra.mxu1 %vm799_vm12, %v1001_v52 }
 0x221   :  { %1286 = vmatprep.mubr.msk.f32.mxu1 %vm1441_vm0, %v1440_v0 }
 0x22c   :  { %v1348_v49 = vpop.eup %1347 }
 0x22d   :  { %v999_v12 = vadd.f32 1.0, %v1348_v49 }
 0x22f   :  { %v1002_v62 = vmul.f32 %v999_v12, %v990_v54 }
 0x231   :  { %1287 = vmatmul.mubr.msk.f32.gmra.mxu1 %vm799_vm12, %v1002_v62 }
 0x2d7   :  { %v1093_v28 = vpop.f32.mrf.mxu0 }
 0x2d8   :  { %v1094_v1 = vadd.f32 %v1162_v26, %v1093_v28 }
 0x2d9   :  { %v1282_v2 = vpop.f32.mrf.mxu0 }
 0x2da   :  { %1107 = vst [vmem:[#allocation8] sm:$0xff] %v1094_v1 }
 0x2e0   :  { %v1098_v24 = vpop.f32.mrf.mxu1 }
 0x2e1   :  { %v1099_v3 = vadd.f32 %v1162_v26, %v1098_v24 }
 0x2e2   :  { %v1285_v22 = vpop.f32.mrf.mxu1 }
 0x2e3   :  { %1108 = vst [vmem:[#allocation8 + $0x8] sm:$0xff] %v1099_v3 }
 0x2f1   :  { %v1103_v0 = vpop.f32.mrf.mxu1 }
 0x2f2   :  { %v1104_v27 = vadd.f32 %v1162_v26, %v1103_v0 }
 0x2f3   :  { %v1288_v63 = vpop.f32.mrf.mxu1 }
 0x2f4   :  { %1109 = vst [vmem:[#allocation8 + $0x10] sm:$0xff] %v1104_v27 }
 0x2f5   :  { %1420 = shalt.err (!%p1417_p5)
}
 0x2f6   :  { %1121 = dma.vmem_to_hbm [thread:$0]  %s1116_s25, 384, %s1763_s7, [#allocation4], %s1437_s29, %s1437_s29, %s1438_s30  }
 0x2f7   :  { %1433 = dma.done.wait [#allocation4], 384  }
 0x2f8   :  { %1434 = vsyncadd [#allocation4], 4294966912 }
 0x2f9   :  { %1125 = vsyncpa [#allocation3], 1 }
 0x2fa   :  { %1126 = vsyncpa [#allocation6], 1 }
 0x2fb   :  { %1127 = vsyncpa [#allocation4], 1 }

// kernel: tpu_custom_call.1
= control target key start
LH: loop header
LB: loop body
LE: loop exit
PB: predicated region body
PF: predicated region fallthrough
CT: control target
= control target key end

     0   :  { %12 = vsyncpa [#allocation3], 0  ;;  %s1756_s0 = inlined_call_operand.vmem [shape: f32[20,8], index: 0, kind: input, shape index: {}]   ;;  %s1757_s1 = inlined_call_operand.vmem [shape: f32[8,64], index: 1, kind: input, shape index: {}]   ;;  %s1758_s2 = inlined_call_operand.hbm [shape: f32[64,64], index: 2, kind: input, shape index: {}]   ;;  %s1759_s3 = inlined_call_operand.hbm [shape: f32[64,64], index: 3, kind: input, shape index: {}]   ;;  %s1760_s4 = inlined_call_operand.vmem [shape: f32[1,64], index: 4, kind: input, shape index: {}]   ;;  %s1761_s5 = inlined_call_operand.hbm [shape: f32[64,128], index: 5, kind: input, shape index: {}]   ;;  %s1762_s6 = inlined_call_operand.vmem [shape: f32[1,128], index: 6, kind: input, shape index: {}]   ;;  %s1763_s7 = inlined_call_operand.hbm [shape: f32[20,128], index: 7, kind: output, shape index: {}]  }
   0x1   :  { %13 = vsyncpa [#allocation6], 0 }
   0x2   :  { %14 = vsyncpa [#allocation4], 0  ;;  %s1435_s24 = smov [#allocation5]   ;;  %s1436_s26 = smov [#allocation2]  }
   0x3   :  { %s36_s25 = sshll.u32 %s1435_s24, 4  ;;  %s24_s27 = sshll.u32 %s1436_s26, 4  ;;  %s37_s25 = int_to_ptr.vmem [resolvable:$true] %s36_s25  ;;  %s25_s27 = int_to_ptr.vmem [resolvable:$true] %s24_s27 }
   0x4   :  { %s1357_s28 = scalar_lea.vmem %s37_s25, 1024  ;;  %p1362_p1 = scmp.lt.s32.totalorder %s37_s25, %s37_s25 }
   0x5   :  { %p1358_p0 = scmp.ne.s32.totalorder %s37_s25, %s1357_s28  ;;  %p1363_p2 = scmp.lt.s32.totalorder %s1357_s28, %s1357_s28 }
   0x7   :  { %p1364_p3 = por %p1363_p2, %p1362_p1 }
   0x9   :  { %p1365_p4 = pnand %p1364_p3, %p1358_p0 }
   0xb   :  { %1368 = shalt.err (!%p1365_p4)
}
   0xc   :  { %s1437_s29 = smov 128   ;;  %s1438_s30 = smov 8  }
   0xd   :  { %42 = dma.hbm_to_vmem [thread:$0]  %s1759_s3, 1024, %s37_s25, [#allocation6], %s1437_s29, %s1437_s29, %s1438_s30  }
   0xe   :  { %s1377_s10 = scalar_lea.vmem %s25_s27, 1024  ;;  %p1382_p6 = scmp.lt.s32.totalorder %s25_s27, %s25_s27 }
   0xf   :  { %p1378_p5 = scmp.ne.s32.totalorder %s25_s27, %s1377_s10  ;;  %p1383_p7 = scmp.lt.s32.totalorder %s1377_s10, %s1377_s10 }
  0x11   :  { %p1384_p8 = por %p1383_p7, %p1382_p6 }
  0x13   :  { %p1385_p9 = pnand %p1384_p8, %p1378_p5 }
  0x15   :  { %1388 = shalt.err (!%p1385_p9)
}
  0x16   :  { %30 = dma.hbm_to_vmem [thread:$0]  %s1758_s2, 1024, %s25_s27, [#allocation3], %s1437_s29, %s1437_s29, %s1438_s30  }
  0x17   :  { %s1439_s13 = smov [#allocation7]  }
  0x18   :  { %s50_s14 = sshll.u32 %s1439_s13, 4  ;;  %s51_s14 = int_to_ptr.vmem [resolvable:$true] %s50_s14 }
  0x19   :  { %s1397_s15 = scalar_lea.vmem %s51_s14, 1024  ;;  %p1402_p11 = scmp.lt.s32.totalorder %s51_s14, %s51_s14 }
  0x1a   :  { %p1398_p10 = scmp.ne.s32.totalorder %s51_s14, %s1397_s15  ;;  %p1403_p12 = scmp.lt.s32.totalorder %s1397_s15, %s1397_s15 }
  0x1c   :  { %p1404_p13 = por %p1403_p12, %p1402_p11 }
  0x1e   :  { %p1405_p0 = pnand %p1404_p13, %p1398_p10 }
  0x20   :  { %1408 = shalt.err (!%p1405_p0)
}
  0x21   :  { %56 = dma.hbm_to_vmem [thread:$0]  %s1761_s5, 1024, %s51_s14, [#allocation6], %s1437_s29, %s1437_s29, %s1438_s30  }
  0x22   :  { %1429 = dma.done.wait [#allocation3], 1024  }
  0x23   :  { %1430 = vsyncadd [#allocation3], 4294966272 }
  0x24   :  { %1431 = dma.done.wait [#allocation6], 2048  }
  0x25   :  { %1432 = vsyncadd [#allocation6], 4294965248  ;;  %v1440_v0 = vmov 0.0   ;;  %vm1441_vm0 = vmmov 0   ;;  %vm72_vm1 = vcmask 64512   ;;  %v71_v1 = vld [vmem:[%s1757_s1] sm:$0xff] }
  0x26   :  { %1203 = vmatprep.subr.mxu0 %v1440_v0  ;;  %1205 = vmatprep.mubr.msk.f32.mxu0 %vm1441_vm0, %v1440_v0  ;;  %v68_v2 = vld [vmem:[%s1756_s0] sm:$0xff]  ;;  %v69_v3 = vld [vmem:[%s1756_s0 + $0x8] sm:$0xff]  ;;  %v70_v4 = vld [vmem:[%s1756_s0 + $0x10] sm:$0xff]  ;;  %v1442_v47 = vmov 683565275   ;;  %s1448_s24 = smov [#allocation8]  }
  0x27   :  { %1214 = vmatprep.subr.mxu1 %v1440_v0  ;;  %1230 = vmatprep.mubr.msk.f32.mxu1 %vm1441_vm0, %v1440_v0  ;;  %v798_v5 = vld [vmem:[#allocation5 + $0x38] sm:$0xff]  ;;  %v797_v7 = vld [vmem:[#allocation5 + $0x30] sm:$0xff]  ;;  %v796_v9 = vld [vmem:[#allocation5 + $0x28] sm:$0xff]  ;;  %v1443_v49 = vmov 2475754826   ;;  %s1115_s25 = sshll.u32 %s1448_s24, 4  ;;  %s1116_s25 = int_to_ptr.vmem [resolvable:$true] %s1115_s25 }
  0x28   :  { %1204 = vmatpush3.msra.mxu0 %v71_v1  ;;  %v478_v6 = vld [vmem:[#allocation2 + $0x38] sm:$0xff]  ;;  %1215 = vmatpush3.msra.mxu1 %v798_v5  ;;  %v477_v8 = vld [vmem:[#allocation2 + $0x30] sm:$0xff]  ;;  %v476_v10 = vld [vmem:[#allocation2 + $0x28] sm:$0xff]  ;;  %v1444_v52 = vmov 2131351028   ;;  %s1409_s26 = scalar_lea.vmem %s1116_s25, 384  ;;  %p1414_p2 = scmp.lt.s32.totalorder %s1116_s25, %s1116_s25 }
  0x29   :  { %1206 = vmatmul.mubr.msk.f32.vlgmr.msra.gmra.mxu0 %vm72_vm1, %v68_v2  ;;  %1239 = vmatprep.subr.mxu0 %v1440_v0  ;;  %v795_v11 = vld [vmem:[#allocation5 + $0x20] sm:$0xff]  ;;  %v794_v13 = vld [vmem:[#allocation5 + $0x18] sm:$0xff]  ;;  %v793_v15 = vld [vmem:[#allocation5 + $0x10] sm:$0xff]  ;;  %v1445_v54 = vmov 2102212464   ;;  %p1410_p1 = scmp.ne.s32.totalorder %s1116_s25, %s1409_s26  ;;  %p1415_p3 = scmp.lt.s32.totalorder %s1409_s26, %s1409_s26 }
  0x2a   :  { %1208 = vmatprep.mubr.msk.f32.mxu0 %vm1441_vm0, %v1440_v0  ;;  %1240 = vmatpush3.msra.mxu0 %v478_v6  ;;  %v475_v12 = vld [vmem:[#allocation2 + $0x20] sm:$0xff]  ;;  %v474_v14 = vld [vmem:[#allocation2 + $0x18] sm:$0xff]  ;;  %v473_v16 = vld [vmem:[#allocation2 + $0x10] sm:$0xff]  ;;  %v1446_v56 = vmov 920167782  }
  0x2b   :  { %1216 = vmatprep.subr.mxu1 %v1440_v0  ;;  %1241 = vmatprep.subr.mxu0 %v1440_v0  ;;  %v792_v17 = vld [vmem:[#allocation5 + $0x8] sm:$0xff]  ;;  %v791_v19 = vld [vmem:[#allocation5] sm:$0xff]  ;;  %v1447_v63 = vmov 1326507024   ;;  %p1416_p4 = por %p1415_p3, %p1414_p2 }
  0x2c   :  { %1217 = vmatpush3.msra.mxu1 %v797_v7  ;;  %1242 = vmatpush3.msra.mxu0 %v477_v8  ;;  %v472_v18 = vld [vmem:[#allocation2 + $0x8] sm:$0xff]  ;;  %v471_v20 = vld [vmem:[#allocation2] sm:$0xff] }
  0x2d   :  { %1209 = vmatmul.mubr.msk.f32.gmra.mxu0 %vm72_vm1, %v69_v3  ;;  %1218 = vmatprep.subr.mxu1 %v1440_v0  ;;  %p1417_p5 = pnand %p1416_p4, %p1410_p1 }
  0x2e   :  { %1211 = vmatprep.mubr.msk.f32.mxu0 %vm1441_vm0, %v1440_v0  ;;  %1243 = vmatprep.subr.mxu0 %v1440_v0 }
  0x2f   :  { %1219 = vmatpush3.msra.mxu1 %v796_v9  ;;  %1244 = vmatpush3.msra.mxu0 %v476_v10 }
  0x30   :  { %1220 = vmatprep.subr.mxu1 %v1440_v0  ;;  %1245 = vmatprep.subr.mxu0 %v1440_v0 }
  0x31   :  { %1212 = vmatmul.mubr.msk.f32.gmra.mxu0 %vm72_vm1, %v70_v4  ;;  %1221 = vmatpush3.msra.mxu1 %v795_v11 }
  0x32   :  { %1255 = vmatprep.mubr.msk.f32.mxu0 %vm1441_vm0, %v1440_v0  ;;  %1246 = vmatpush3.msra.mxu0 %v475_v12 }
  0x33   :  { %1222 = vmatprep.subr.mxu1 %v1440_v0  ;;  %1247 = vmatprep.subr.mxu0 %v1440_v0 }
  0x34   :  { %1223 = vmatpush3.msra.mxu1 %v794_v13  ;;  %1248 = vmatpush3.msra.mxu0 %v474_v14 }
  0x35   :  { %1224 = vmatprep.subr.mxu1 %v1440_v0  ;;  %1249 = vmatprep.subr.mxu0 %v1440_v0 }
  0x36   :  { %1225 = vmatpush3.msra.mxu1 %v793_v15  ;;  %1250 = vmatpush3.msra.mxu0 %v473_v16 }
  0x37   :  { %1226 = vmatprep.subr.mxu1 %v1440_v0  ;;  %1251 = vmatprep.subr.mxu0 %v1440_v0 }
  0x38   :  { %1227 = vmatpush3.msra.mxu1 %v792_v17  ;;  %1252 = vmatpush3.msra.mxu0 %v472_v18 }
  0x39   :  { %1228 = vmatprep.subr.mxu1 %v1440_v0  ;;  %1253 = vmatprep.subr.mxu0 %v1440_v0 }
  0x3a   :  { %1229 = vmatpush3.msra.mxu1 %v791_v19  ;;  %1254 = vmatpush3.msra.mxu0 %v471_v20 }
  0x3b   :  { %1264 = vmatprep.subr.mxu0 %v1440_v0  ;;  %1289 = vmatprep.subr.mxu1 %v1440_v0 }
  0xe9   :  { %v1548_v21 = vpop.f32.mrf.mxu0 }
  0xea   :  { %v162_v22 = vand.u32 2147483647, %v1548_v21  ;;  %v165_v23 = vand.u32 2139095040, %v1548_v21 }
  0xeb   :  { %v1207_v24 = vpop.f32.mrf.mxu0 }
  0xec   :  { %v166_v25 = vshrl.u32 %v165_v23, 23  ;;  %v169_v26 = vand.u32 8388607, %v162_v22 }
  0xed   :  { %v1554_v27 = vpop.f32.mrf.mxu0 }
  0xee   :  { %v1131_v28 = vadd.s32 4294967169, %v166_v25  ;;  %v265_v29 = vand.u32 2147483647, %v1554_v27  ;;  %v268_v30 = vand.u32 2139095040, %v1554_v27  ;;  %v170_v33 = vor.u32 8388608, %v169_v26 }
  0xef   :  { %v1210_v31 = vpop.f32.mrf.mxu0 }
  0xf0   :  { %v172_v32 = vadd.s32 1, %v1131_v28  ;;  %v269_v34 = vshrl.u32 %v268_v30, 23  ;;  %v272_v35 = vand.u32 8388607, %v265_v29  ;;  %v1563_v43 = vshll.u32 %v170_v33, 8 }
  0xf1   :  { %v1560_v36 = vpop.f32.mrf.mxu0 }
  0xf2   :  { %vm173_vm2 = vcmp.gt.s32.totalorder %v172_v32, 0  ;;  %v1135_v38 = vadd.s32 4294967169, %v269_v34  ;;  %v371_v39 = vand.u32 2139095040, %v1560_v36  ;;  %v273_v44 = vor.u32 8388608, %v272_v35 }
  0xf3   :  { %v174_v37 = vsel %vm173_vm2, %v172_v32, 0  ;;  %v1213_v40 = vpop.f32.mrf.mxu0  ;;  %v368_v24 = vand.u32 2147483647, %v1560_v36 }
  0xf4   :  { %v175_v41 = vshrl.u32 %v174_v37, 5  ;;  %v176_v42 = vand.u32 31, %v174_v37  ;;  %v275_v45 = vadd.s32 1, %v1135_v38  ;;  %v372_v51 = vshrl.u32 %v371_v39, 23 }
  0xf5   :  { %v313_v33 = vshll.u32 %v273_v44, 8 }
  0xf6   :  { %v177_v46 = vsub.s32 32, %v176_v42  ;;  %v179_v48 = vshll.u32 %v1442_v47, %v176_v42  ;;  %v182_v50 = vshll.u32 %v1443_v49, %v176_v42  ;;  %v185_v53 = vshll.u32 %v1444_v52, %v176_v42 }
  0xf7   :  { %v188_v55 = vshll.u32 %v1445_v54, %v176_v42  ;;  %v191_v57 = vshll.u32 %v1446_v56, %v176_v42  ;;  %vm194_vm3 = vcmp.lt.s32.totalorder %v175_v41, 1  ;;  %vm195_vm4 = vcmp.lt.s32.totalorder %v175_v41, 2 }
  0xf8   :  { %v180_v58 = vshrl.u32 %v1443_v49, %v177_v46  ;;  %v183_v59 = vshrl.u32 %v1444_v52, %v177_v46  ;;  %v186_v60 = vshrl.u32 %v1445_v54, %v177_v46  ;;  %v178_v61 = vshrl.u32 %v1442_v47, %v177_v46 }
  0xf9   :  { %v189_v62 = vshrl.u32 %v1446_v56, %v177_v46  ;;  %v192_v1 = vshrl.u32 %v1447_v63, %v177_v46  ;;  %vm196_vm5 = vcmp.lt.s32.totalorder %v175_v41, 3  ;;  %vm276_vm6 = vcmp.gt.s32.totalorder %v275_v45, 0 }
  0xfa   :  { %v181_v2 = vor.u32 %v180_v58, %v179_v48  ;;  %v184_v3 = vor.u32 %v183_v59, %v182_v50  ;;  %v187_v4 = vor.u32 %v186_v60, %v185_v53  ;;  %vm197_vm7 = vcmp.lt.s32.totalorder %v175_v41, 4 }
  0xfb   :  { %v190_v5 = vor.u32 %v189_v62, %v188_v55  ;;  %v193_v6 = vor.u32 %v192_v1, %v191_v57  ;;  %v277_v7 = vsel %vm276_vm6, %v275_v45, 0  ;;  %v1139_v34 = vadd.s32 4294967169, %v372_v51 }
  0xfc   :  { %v198_v8 = vsel %vm194_vm3, %v178_v61, %v181_v2  ;;  %v199_v9 = vsel %vm197_vm7, %v187_v4, 2102212464  ;;  %v202_v10 = vsel %vm194_vm3, %v181_v2, %v184_v3  ;;  %v206_v11 = vsel %vm194_vm3, %v184_v3, %v187_v4 }
  0xfd   :  { %v200_v12 = vsel %vm196_vm5, %v184_v3, %v199_v9  ;;  %v203_v13 = vsel %vm197_vm7, %v190_v5, 920167782  ;;  %v207_v14 = vsel %vm197_vm7, %v193_v6, 1326507024  ;;  %v278_v15 = vshrl.u32 %v277_v7, 5 }
  0xfe   :  { %v201_v16 = vsel %vm195_vm4, %v198_v8, %v200_v12  ;;  %v204_v17 = vsel %vm196_vm5, %v187_v4, %v203_v13  ;;  %v208_v18 = vsel %vm196_vm5, %v190_v5, %v207_v14  ;;  %v279_v19 = vand.u32 31, %v277_v7 }
  0xff   :  { %v205_v20 = vsel %vm195_vm4, %v202_v10, %v204_v17  ;;  %v209_v23 = vsel %vm195_vm4, %v206_v11, %v208_v18  ;;  %v217_v31 = vmul.u32 %v1563_v43, %v201_v16  ;;  %vm297_vm8 = vcmp.lt.s32.totalorder %v278_v15, 1 }
 0x100   :  { %v1587_v25 = vmul.u32.u64.low %v1563_v43, %v209_v23  ;;  %v1588_v26 = vmul.u32.u64.high %v1563_v43, %v209_v23, %v1587_v25  ;;  %v1591_v28 = vmul.u32.u64.low %v1563_v43, %v205_v20  ;;  %v1592_v30 = vmul.u32.u64.high %v1563_v43, %v205_v20, %v1591_v28 }
 0x101   :  { %v280_v32 = vsub.s32 32, %v279_v19  ;;  %v282_v35 = vshll.u32 %v1442_v47, %v279_v19  ;;  %v285_v37 = vshll.u32 %v1443_v49, %v279_v19  ;;  %v288_v38 = vshll.u32 %v1444_v52, %v279_v19 }
 0x102   :  { %v291_v42 = vshll.u32 %v1445_v54, %v279_v19  ;;  %vm219_vm9 = vc.u32 %v1588_v26, %v1591_v28  ;;  %v220_v43 = vadd.s32 1, %v1592_v30  ;;  %v294_v45 = vshll.u32 %v1446_v56, %v279_v19 }
 0x103   :  { %v283_v39 = vshrl.u32 %v1443_v49, %v280_v32  ;;  %v286_v40 = vshrl.u32 %v1444_v52, %v280_v32  ;;  %v289_v41 = vshrl.u32 %v1445_v54, %v280_v32  ;;  %v292_v44 = vshrl.u32 %v1446_v56, %v280_v32 }
 0x104   :  { %v295_v51 = vshrl.u32 %v1447_v63, %v280_v32  ;;  %v221_v53 = vsel %vm219_vm9, %v220_v43, %v1592_v30  ;;  %vm298_vm10 = vcmp.lt.s32.totalorder %v278_v15, 2  ;;  %vm300_vm11 = vcmp.lt.s32.totalorder %v278_v15, 4 }
 0x105   :  { %v284_v46 = vor.u32 %v283_v39, %v282_v35  ;;  %v287_v48 = vor.u32 %v286_v40, %v285_v37  ;;  %v290_v50 = vor.u32 %v289_v41, %v288_v38  ;;  %v293_v55 = vor.u32 %v292_v44, %v291_v42 }
 0x106   :  { %v222_v57 = vadd.s32 %v221_v53, %v217_v31  ;;  %v281_v58 = vshrl.u32 %v1442_v47, %v280_v32  ;;  %v296_v59 = vor.u32 %v295_v51, %v294_v45  ;;  %vm299_vm12 = vcmp.lt.s32.totalorder %v278_v15, 3 }
 0x107   :  { %v302_v60 = vsel %vm300_vm11, %v290_v50, 2102212464  ;;  %v305_v61 = vsel %vm297_vm8, %v284_v46, %v287_v48  ;;  %v306_v62 = vsel %vm300_vm11, %v293_v55, 920167782  ;;  %v309_v1 = vsel %vm297_vm8, %v287_v48, %v290_v50 }
 0x108   :  { %v223_v2 = vadd.s32 536870912, %v222_v57  ;;  %v301_v3 = vsel %vm297_vm8, %v281_v58, %v284_v46  ;;  %v307_v4 = vsel %vm299_vm12, %v290_v50, %v306_v62  ;;  %v310_v5 = vsel %vm300_vm11, %v296_v59, 1326507024 }
 0x109   :  { %v303_v6 = vsel %vm299_vm12, %v287_v48, %v302_v60  ;;  %v308_v7 = vsel %vm298_vm10, %v305_v61, %v307_v4  ;;  %v311_v8 = vsel %vm299_vm12, %v293_v55, %v310_v5  ;;  %v378_v9 = vadd.s32 1, %v1139_v34 }
 0x10a   :  { %v1615_v10 = vshrl.u32 %v223_v2, 30  ;;  %v312_v11 = vsel %vm298_vm10, %v309_v1, %v311_v8  ;;  %v1618_v12 = vmul.u32.u64.low %v313_v33, %v308_v7  ;;  %v1619_v13 = vmul.u32.u64.high %v313_v33, %v308_v7, %v1618_v12 }
 0x10b   :  { %v1622_v14 = vmul.u32.u64.low %v313_v33, %v312_v11  ;;  %v1623_v16 = vmul.u32.u64.high %v313_v33, %v312_v11, %v1622_v14  ;;  %vm379_vm13 = vcmp.gt.s32.totalorder %v378_v9, 0  ;;  %v304_v18 = vsel %vm298_vm10, %v301_v3, %v303_v6 }
 0x10c   :  { %v225_v17 = vshll.u32 %v1615_v10, 30  ;;  %v375_v19 = vand.u32 8388607, %v368_v24  ;;  %v380_v20 = vsel %vm379_vm13, %v378_v9, 0  ;;  %v323_v30 = vadd.s32 1, %v1619_v13 }
 0x10d   :  { %v382_v23 = vand.u32 31, %v380_v20  ;;  %v320_v31 = vmul.u32 %v313_v33, %v304_v18  ;;  %vm322_vm14 = vc.u32 %v1623_v16, %v1618_v12  ;;  %v381_v15 = vshrl.u32 %v380_v20, 5 }
 0x10e   :  { %v226_v25 = vsub.s32 %v222_v57, %v225_v17  ;;  %v324_v35 = vsel %vm322_vm14, %v323_v30, %v1619_v13  ;;  %v376_v37 = vor.u32 8388608, %v375_v19  ;;  %v218_v50 = vadd.s32 %v1591_v28, %v1588_v26 }
 0x10f   :  { %v383_v32 = vsub.s32 32, %v382_v23  ;;  %v325_v38 = vadd.s32 %v324_v35, %v320_v31  ;;  %v385_v39 = vshll.u32 %v1442_v47, %v382_v23  ;;  %v391_v43 = vshll.u32 %v1444_v52, %v382_v23 }
 0x110   :  { %v228_v34 = vsub.s32 0, %v226_v25  ;;  %v388_v45 = vshll.u32 %v1443_v49, %v382_v23  ;;  %v394_v46 = vshll.u32 %v1445_v54, %v382_v23  ;;  %vm400_vm15 = vcmp.lt.s32.totalorder %v381_v15, 1 }
 0x111   :  { %v386_v40 = vshrl.u32 %v1443_v49, %v383_v32  ;;  %v389_v42 = vshrl.u32 %v1444_v52, %v383_v32  ;;  %v392_v33 = vshrl.u32 %v1445_v54, %v383_v32  ;;  %v326_v44 = vadd.s32 536870912, %v325_v38 }
 0x112   :  { %v1132_v41 = vmin.u32 %v228_v34, %v226_v25  ;;  %v395_v48 = vshrl.u32 %v1446_v56, %v383_v32  ;;  %v398_v52 = vshrl.u32 %v1447_v63, %v383_v32  ;;  %v384_v61 = vshrl.u32 %v1442_v47, %v383_v32 }
 0x113   :  { %v387_v53 = vor.u32 %v386_v40, %v385_v39  ;;  %v393_v55 = vor.u32 %v392_v33, %v391_v43  ;;  %v1643_v57 = vshrl.u32 %v326_v44, 30  ;;  %v390_v58 = vor.u32 %v389_v42, %v388_v45 }
 0x114   :  { %v230_v51 = vclz %v1132_v41  ;;  %v396_v59 = vor.u32 %v395_v48, %v394_v46  ;;  %v397_v49 = vshll.u32 %v1446_v56, %v382_v23  ;;  %v416_v54 = vshll.u32 %v376_v37, 8 }
 0x115   :  { %v328_v62 = vshll.u32 %v1643_v57, 30  ;;  %vm401_vm1 = vcmp.lt.s32.totalorder %v381_v15, 2  ;;  %vm403_vm2 = vcmp.lt.s32.totalorder %v381_v15, 4  ;;  %vm402_vm4 = vcmp.lt.s32.totalorder %v381_v15, 3 }
 0x116   :  { %v1133_v60 = vadd.s32 4294967294, %v230_v51  ;;  %v399_v26 = vor.u32 %v398_v52, %v397_v49  ;;  %v405_v28 = vsel %vm403_vm2, %v393_v55, 2102212464  ;;  %v409_v1 = vsel %vm403_vm2, %v396_v59, 920167782 }
 0x117   :  { %v329_v3 = vsub.s32 %v325_v38, %v328_v62  ;;  %v408_v63 = vsel %vm400_vm15, %v387_v53, %v390_v58  ;;  %v404_v56 = vsel %vm400_vm15, %v384_v61, %v387_v53  ;;  %v406_v5 = vsel %vm402_vm4, %v390_v58, %v405_v28 }
 0x118   :  { %vm1134_vm3 = vcmp.lt.s32.totalorder %v1133_v60, 0  ;;  %v410_v8 = vsel %vm402_vm4, %v393_v55, %v409_v1  ;;  %v412_v9 = vsel %vm400_vm15, %v390_v58, %v393_v55  ;;  %v413_v17 = vsel %vm403_vm2, %v399_v26, 1326507024 }
 0x119   :  { %v233_v2 = vsel %vm1134_vm3, 0, %v1133_v60  ;;  %v331_v7 = vsub.s32 0, %v329_v3  ;;  %v411_v14 = vsel %vm401_vm1, %v408_v63, %v410_v8  ;;  %v414_v19 = vsel %vm402_vm4, %v396_v59, %v413_v17 }
 0x11a   :  { %v234_v47 = vsub.s32 32, %v233_v2  ;;  %v238_v4 = vsub.s32 4294967266, %v233_v2  ;;  %v235_v6 = vshll.u32 %v226_v25, %v233_v2  ;;  %v415_v25 = vsel %vm401_vm1, %v412_v9, %v414_v19 }
 0x11b   :  { %v1136_v18 = vmin.u32 %v331_v7, %v329_v3  ;;  %v1656_v20 = vmul.u32.u64.low %v416_v54, %v411_v14  ;;  %v1657_v23 = vmul.u32.u64.high %v416_v54, %v411_v14, %v1656_v20  ;;  %v407_v38 = vsel %vm401_vm1, %v404_v56, %v406_v5 }
 0x11c   :  { %v236_v11 = vshrl.u32 %v218_v50, %v234_v47  ;;  %v239_v13 = vadd.s32 127, %v238_v4  ;;  %v1661_v34 = vmul.u32.u64.low %v416_v54, %v415_v25  ;;  %v1662_v35 = vmul.u32.u64.high %v416_v54, %v415_v25, %v1661_v34 }
 0x11d   :  { %v333_v32 = vclz %v1136_v18  ;;  %v426_v40 = vadd.s32 1, %v1657_v23  ;;  %v423_v43 = vmul.u32 %v416_v54, %v407_v38  ;;  %v248_v44 = vsub.s32 4, %v1615_v10 }
 0x11e   :  { %v237_v30 = vor.u32 %v236_v11, %v235_v6  ;;  %v240_v31 = vshll.u32 %v239_v13, 23  ;;  %vm425_vm6 = vc.u32 %v1662_v35, %v1656_v20  ;;  %v321_v15 = vadd.s32 %v1618_v12, %v1623_v16 }
 0x11f   :  { %v1137_v39 = vadd.s32 4294967294, %v333_v32  ;;  %v427_v46 = vsel %vm425_vm6, %v426_v40, %v1657_v23  ;;  %vm164_vm7 = vcmp.lt.s32.totalorder %v1548_v21, 0  ;;  %vm163_vm8 = vcmp.le.f32.partialorder %v162_v22, 0.7853982 }
 0x120   :  { %v241_v37 = vor.u32 4788187, %v240_v31  ;;  %v244_v42 = vcvt.s32.f32 %v237_v30  ;;  %v428_v51 = vadd.s32 %v427_v46, %v423_v43  ;;  %v249_v61 = vsel %vm164_vm7, %v248_v44, %v1615_v10 }
 0x121   :  { %vm1138_vm5 = vcmp.lt.s32.totalorder %v1137_v39, 0  ;;  %v251_v28 = vsel %vm163_vm8, 0, %v249_v61  ;;  %vm267_vm9 = vcmp.lt.s32.totalorder %v1554_v27, 0  ;;  %vm266_vm10 = vcmp.le.f32.partialorder %v265_v29, 0.7853982 }
 0x122   :  { %v242_v41 = vand.u32 2147483647, %v241_v37  ;;  %v336_v45 = vsel %vm1138_vm5, 0, %v1137_v39  ;;  %v429_v52 = vadd.s32 536870912, %v428_v51  ;;  %v572_v10 = vadd.s32 3, %v251_v28 }
 0x123   :  { %v337_v48 = vsub.s32 32, %v336_v45  ;;  %v341_v50 = vsub.s32 4294967266, %v336_v45  ;;  %v338_v55 = vshll.u32 %v329_v3, %v336_v45  ;;  %v351_v3 = vsub.s32 4, %v1643_v57 }
 0x124   :  { %v245_v33 = vmul.f32 %v244_v42, %v242_v41  ;;  %v1677_v16 = vshrl.u32 %v429_v52, 30  ;;  %v255_v6 = vand.u32 3, %v251_v28  ;;  %v573_v13 = vand.u32 3, %v572_v10 }
 0x125   :  { %v339_v58 = vshrl.u32 %v321_v15, %v337_v48  ;;  %v342_v59 = vadd.s32 127, %v341_v50  ;;  %v352_v56 = vsel %vm267_vm9, %v351_v3, %v1643_v57  ;;  %vm799_vm12 = vcmask 523264  }
 0x126   :  { %v246_v53 = vxor.u32 2147483648, %v245_v33  ;;  %v431_v26 = vshll.u32 %v1677_v16, 30  ;;  %v354_v11 = vsel %vm266_vm10, 0, %v352_v56  ;;  %vm256_vm11 = vcmp.lt.s32.totalorder %v255_v6, 2 }
 0x127   :  { %v340_v54 = vor.u32 %v339_v58, %v338_v55  ;;  %v343_v12 = vshll.u32 %v342_v59, 23  ;;  %vm257_vm14 = vcmp.eq.s32.totalorder %v255_v6, 0  ;;  %vm260_vm15 = vcmp.eq.s32.totalorder %v255_v6, 2 }
 0x128   :  { %v247_v60 = vsel %vm164_vm7, %v246_v53, %v245_v33  ;;  %v432_v22 = vsub.s32 %v428_v51, %v431_v26  ;;  %v676_v57 = vadd.s32 3, %v354_v11  ;;  %v424_v29 = vadd.s32 %v1656_v20, %v1662_v35 }
 0x129   :  { %v250_v49 = vsel %vm163_vm8, %v1548_v21, %v247_v60  ;;  %v344_v62 = vor.u32 4788187, %v343_v12  ;;  %v347_v2 = vcvt.s32.f32 %v340_v54  ;;  %vm574_vm1 = vcmp.lt.s32.totalorder %v573_v13, 2 }
 0x12a   :  { %1331 = vcosq.f32 %v250_v49  ;;  %v434_v47 = vsub.s32 0, %v432_v22  ;;  %vm578_vm2 = vcmp.eq.s32.totalorder %v573_v13, 2  ;;  %vm575_vm3 = vcmp.eq.s32.totalorder %v573_v13, 0 }
 0x12b   :  { %1333 = vsinq.f32 %v250_v49  ;;  %v345_v1 = vand.u32 2147483647, %v344_v62  ;;  %vm254_vm4 = vweird.f32 %v1548_v21  ;;  %v677_v46 = vand.u32 3, %v676_v57  ;;  %v1007_v57 = vld [vmem:[#allocation7 + $0x20] sm:$0xff] }
 0x12c   :  { %v1140_v5 = vmin.u32 %v434_v47, %v432_v22  ;;  %v358_v21 = vand.u32 3, %v354_v11  ;;  %vm357_vm5 = vweird.f32 %v1554_v27  ;;  %vm370_vm6 = vcmp.lt.s32.totalorder %v1560_v36, 0 }
 0x12d   :  { %v348_v63 = vmul.f32 %v347_v2, %v345_v1  ;;  %vm678_vm7 = vcmp.lt.s32.totalorder %v677_v46, 2  ;;  %vm679_vm8 = vcmp.eq.s32.totalorder %v677_v46, 0  ;;  %v454_v61 = vsub.s32 4, %v1677_v16 }
 0x12e   :  { %v436_v8 = vclz %v1140_v5 }
 0x12f   :  { %v349_v4 = vxor.u32 2147483648, %v348_v63 }
 0x130   :  { %v1141_v14 = vadd.s32 4294967294, %v436_v8 }
 0x131   :  { %v350_v7 = vsel %vm267_vm9, %v349_v4, %v348_v63  ;;  %vm682_vm9 = vcmp.eq.s32.totalorder %v677_v46, 2 }
 0x132   :  { %v353_v9 = vsel %vm266_vm10, %v1554_v27, %v350_v7  ;;  %vm1142_vm13 = vcmp.lt.s32.totalorder %v1141_v14, 0  ;;  %vm363_vm10 = vcmp.eq.s32.totalorder %v358_v21, 2 }
 0x133   :  { %1335 = vcosq.f32 %v353_v9  ;;  %v439_v19 = vsel %vm1142_vm13, 0, %v1141_v14  ;;  %vm359_vm13 = vcmp.lt.s32.totalorder %v358_v21, 2  ;;  %v1010_v14 = vld [vmem:[#allocation7 + $0x38] sm:$0xff] }
 0x134   :  { %1337 = vsinq.f32 %v353_v9  ;;  %v440_v30 = vsub.s32 32, %v439_v19  ;;  %v444_v31 = vsub.s32 4294967266, %v439_v19  ;;  %v441_v32 = vshll.u32 %v432_v22, %v439_v19  ;;  %v1004_v19 = vld [vmem:[#allocation7 + $0x8] sm:$0xff] }
 0x136   :  { %v442_v38 = vshrl.u32 %v424_v29, %v440_v30  ;;  %v445_v39 = vadd.s32 127, %v444_v31  ;;  %v1005_v29 = vld [vmem:[#allocation7 + $0x10] sm:$0xff] }
 0x137   :  { %v1332_v17 = vpop.eup %1331 }
 0x138   :  { %v1334_v18 = vpop.eup %1333  ;;  %v261_v23 = vxor.u32 2147483648, %v1332_v17  ;;  %v443_v42 = vor.u32 %v442_v38, %v441_v32  ;;  %v446_v43 = vshll.u32 %v445_v39, 23 }
 0x139   :  { %v258_v25 = vxor.u32 2147483648, %v1334_v18 }
 0x13a   :  { %v262_v34 = vsel %vm260_vm15, %v261_v23, %v1334_v18  ;;  %v580_v37 = vsel %vm578_vm2, %v261_v23, %v1334_v18  ;;  %v447_v45 = vor.u32 4788187, %v446_v43  ;;  %v450_v48 = vcvt.s32.f32 %v443_v42  ;;  %v1006_v18 = vld [vmem:[#allocation7 + $0x18] sm:$0xff]  ;;  %v1003_v23 = vld [vmem:[#allocation7] sm:$0xff] }
 0x13b   :  { %v259_v40 = vsel %vm257_vm14, %v1332_v17, %v258_v25  ;;  %v577_v41 = vsel %vm575_vm3, %v1332_v17, %v258_v25  ;;  %vm369_vm14 = vcmp.le.f32.partialorder %v368_v24, 0.7853982  ;;  %v455_v24 = vsel %vm370_vm6, %v454_v61, %v1677_v16  ;;  %v1008_v17 = vld [vmem:[#allocation7 + $0x28] sm:$0xff]  ;;  %v1161_v25 = vld [vmem:[%s1760_s4] ss:$0 sm:$0xff] }
 0x13c   :  { %v263_v20 = vsel %vm256_vm11, %v259_v40, %v262_v34  ;;  %v581_v35 = vsel %vm574_vm1, %v577_v41, %v580_v37  ;;  %v448_v15 = vand.u32 2147483647, %v447_v45  ;;  %vm360_vm11 = vcmp.eq.s32.totalorder %v358_v21, 0 }
 0x13d   :  { %v264_v33 = vsel %vm254_vm4, nan, %v263_v20  ;;  %v582_v44 = vsel %vm254_vm4, nan, %v581_v35  ;;  %v457_v3 = vsel %vm369_vm14, 0, %v455_v24 }
 0x13e   :  { %1231 = vmatmul.mubr.msk.f32.vlgmr.msra.gmra.mxu1 %vm799_vm12, %v582_v44  ;;  %1256 = vmatmul.mubr.msk.f32.vlgmr.msra.gmra.mxu0 %vm799_vm12, %v264_v33  ;;  %v451_v53 = vmul.f32 %v450_v48, %v448_v15  ;;  %v780_v22 = vadd.s32 3, %v457_v3  ;;  %v461_v63 = vand.u32 3, %v457_v3 }
 0x13f   :  { %1233 = vmatprep.mubr.msk.f32.mxu1 %vm1441_vm0, %v1440_v0  ;;  %1258 = vmatprep.mubr.msk.f32.mxu0 %vm1441_vm0, %v1440_v0 }
 0x140   :  { %v1336_v50 = vpop.eup %1335  ;;  %v452_v59 = vxor.u32 2147483648, %v451_v53  ;;  %v781_v27 = vand.u32 3, %v780_v22  ;;  %vm466_vm1 = vcmp.eq.s32.totalorder %v461_v63, 2  ;;  %vm463_vm3 = vcmp.eq.s32.totalorder %v461_v63, 0  ;;  %1265 = vmatpush3.msra.mxu0 %v1010_v14  ;;  %1297 = vmatpush3.msra.mxu1 %v1010_v14 }
 0x141   :  { %v1338_v51 = vpop.eup %1337  ;;  %v364_v55 = vxor.u32 2147483648, %v1336_v50  ;;  %1266 = vmatprep.subr.mxu0 %v1440_v0  ;;  %1290 = vmatprep.subr.mxu1 %v1440_v0 }
 0x142   :  { %v361_v58 = vxor.u32 2147483648, %v1338_v51  ;;  %v453_v12 = vsel %vm370_vm6, %v452_v59, %v451_v53  ;;  %vm786_vm15 = vcmp.eq.s32.totalorder %v781_v27, 2  ;;  %vm783_vm2 = vcmp.eq.s32.totalorder %v781_v27, 0 }
 0x143   :  { %v684_v52 = vsel %vm682_vm9, %v364_v55, %v1338_v51  ;;  %v365_v60 = vsel %vm363_vm10, %v364_v55, %v1338_v51  ;;  %v456_v28 = vsel %vm369_vm14, %v1560_v36, %v453_v12  ;;  %vm782_vm4 = vcmp.lt.s32.totalorder %v781_v27, 2 }
 0x144   :  { %v681_v49 = vsel %vm679_vm8, %v1336_v50, %v361_v58  ;;  %v362_v54 = vsel %vm360_vm11, %v1336_v50, %v361_v58  ;;  %1339 = vcosq.f32 %v456_v28  ;;  %vm460_vm6 = vweird.f32 %v1560_v36  ;;  %v1009_v36 = vld [vmem:[#allocation7 + $0x30] sm:$0xff] }
 0x145   :  { %v685_v62 = vsel %vm678_vm7, %v681_v49, %v684_v52  ;;  %v366_v26 = vsel %vm359_vm13, %v362_v54, %v365_v60  ;;  %1341 = vsinq.f32 %v456_v28  ;;  %1267 = vmatpush3.msra.mxu0 %v1009_v36  ;;  %1298 = vmatpush3.msra.mxu1 %v1009_v36 }
 0x146   :  { %v686_v1 = vsel %vm357_vm5, nan, %v685_v62  ;;  %v367_v2 = vsel %vm357_vm5, nan, %v366_v26  ;;  %vm462_vm5 = vcmp.lt.s32.totalorder %v461_v63, 2  ;;  %1268 = vmatprep.subr.mxu0 %v1440_v0  ;;  %1291 = vmatprep.subr.mxu1 %v1440_v0  ;;  %v1162_v26 = vld [vmem:[%s1762_s6] ss:$0 sm:$0xff] }
 0x147   :  { %1234 = vmatmul.mubr.msk.f32.gmra.mxu1 %vm799_vm12, %v686_v1  ;;  %1259 = vmatmul.mubr.msk.f32.gmra.mxu0 %vm799_vm12, %v367_v2 }
 0x148   :  { %1236 = vmatprep.mubr.msk.f32.mxu1 %vm1441_vm0, %v1440_v0  ;;  %1261 = vmatprep.mubr.msk.f32.mxu0 %vm1441_vm0, %v1440_v0 }
 0x149   :  { %1269 = vmatpush3.msra.mxu0 %v1008_v17  ;;  %1299 = vmatpush3.msra.mxu1 %v1008_v17 }
 0x14a   :  { %1270 = vmatprep.subr.mxu0 %v1440_v0  ;;  %1292 = vmatprep.subr.mxu1 %v1440_v0 }
 0x14b   :  { %1271 = vmatpush3.msra.mxu0 %v1007_v57  ;;  %1300 = vmatpush3.msra.mxu1 %v1007_v57 }
 0x14c   :  { %1272 = vmatprep.subr.mxu0 %v1440_v0  ;;  %1293 = vmatprep.subr.mxu1 %v1440_v0 }
 0x14d   :  { %1273 = vmatpush3.msra.mxu0 %v1006_v18  ;;  %1301 = vmatpush3.msra.mxu1 %v1006_v18 }
 0x14e   :  { %1274 = vmatprep.subr.mxu0 %v1440_v0  ;;  %1294 = vmatprep.subr.mxu1 %v1440_v0 }
 0x14f   :  { %1275 = vmatpush3.msra.mxu0 %v1005_v29  ;;  %1302 = vmatpush3.msra.mxu1 %v1005_v29 }
 0x150   :  { %1276 = vmatprep.subr.mxu0 %v1440_v0  ;;  %1295 = vmatprep.subr.mxu1 %v1440_v0 }
 0x151   :  { %v1340_v47 = vpop.eup %1339  ;;  %1277 = vmatpush3.msra.mxu0 %v1004_v19  ;;  %1303 = vmatpush3.msra.mxu1 %v1004_v19 }
 0x152   :  { %v1342_v10 = vpop.eup %1341  ;;  %v467_v4 = vxor.u32 2147483648, %v1340_v47  ;;  %1278 = vmatprep.subr.mxu0 %v1440_v0  ;;  %1296 = vmatprep.subr.mxu1 %v1440_v0 }
 0x153   :  { %v464_v56 = vxor.u32 2147483648, %v1342_v10  ;;  %1279 = vmatpush3.msra.mxu0 %v1003_v23  ;;  %1304 = vmatpush3.msra.mxu1 %v1003_v23 }
 0x154   :  { %v788_v5 = vsel %vm786_vm15, %v467_v4, %v1342_v10  ;;  %v468_v16 = vsel %vm466_vm1, %v467_v4, %v1342_v10 }
 0x155   :  { %v785_v6 = vsel %vm783_vm2, %v1340_v47, %v464_v56  ;;  %v465_v7 = vsel %vm463_vm3, %v1340_v47, %v464_v56 }
 0x156   :  { %v789_v8 = vsel %vm782_vm4, %v785_v6, %v788_v5  ;;  %v469_v9 = vsel %vm462_vm5, %v465_v7, %v468_v16 }
 0x157   :  { %v790_v11 = vsel %vm460_vm6, nan, %v789_v8  ;;  %v470_v13 = vsel %vm460_vm6, nan, %v469_v9 }
 0x158   :  { %1237 = vmatmul.mubr.msk.f32.gmra.mxu1 %vm799_vm12, %v790_v11  ;;  %1262 = vmatmul.mubr.msk.f32.gmra.mxu0 %vm799_vm12, %v470_v13 }
 0x159   :  { %1280 = vmatprep.mubr.msk.f32.mxu0 %vm1441_vm0, %v1440_v0  ;;  %1283 = vmatprep.mubr.msk.f32.mxu1 %vm1441_vm0, %v1440_v0 }
 0x1fe   :  { %v875_v30 = vpop.f32.mrf.mxu1  ;;  %v964_v31 = vpop.f32.mrf.mxu0 }
 0x1ff   :  { %v965_v32 = vadd.f32 %v964_v31, %v875_v30 }
 0x200   :  { %v1232_v34 = vpop.f32.mrf.mxu1  ;;  %v1257_v37 = vpop.f32.mrf.mxu0 }
 0x201   :  { %v985_v38 = vadd.f32 %v1161_v25, %v965_v32 }
 0x203   :  { %v991_v39 = vmul.f32 0.70710677, %v985_v38  ;;  %v988_v45 = vmul.f32 0.5, %v985_v38 }
 0x205   :  { %1343 = verf.f32 %v991_v39 }
 0x207   :  { %v880_v40 = vpop.f32.mrf.mxu1  ;;  %v969_v41 = vpop.f32.mrf.mxu0 }
 0x208   :  { %v970_v20 = vadd.f32 %v969_v41, %v880_v40 }
 0x209   :  { %v1235_v35 = vpop.f32.mrf.mxu1  ;;  %v1260_v42 = vpop.f32.mrf.mxu0 }
 0x20a   :  { %v986_v43 = vadd.f32 %v1161_v25, %v970_v20 }
 0x20c   :  { %v992_v33 = vmul.f32 0.70710677, %v986_v43  ;;  %v989_v51 = vmul.f32 0.5, %v986_v43 }
 0x20e   :  { %1345 = verf.f32 %v992_v33 }
 0x212   :  { %v1344_v44 = vpop.eup %1343 }
 0x213   :  { %v997_v46 = vadd.f32 1.0, %v1344_v44 }
 0x215   :  { %v1000_v21 = vmul.f32 %v997_v46, %v988_v45 }
 0x217   :  { %1281 = vmatmul.mubr.msk.f32.vlgmr.msra.gmra.mxu0 %vm799_vm12, %v1000_v21 }
 0x218   :  { %v885_v48 = vpop.f32.mrf.mxu1  ;;  %v974_v50 = vpop.f32.mrf.mxu0 }
 0x219   :  { %v975_v55 = vadd.f32 %v974_v50, %v885_v48 }
 0x21a   :  { %v1238_v58 = vpop.f32.mrf.mxu1  ;;  %v1263_v59 = vpop.f32.mrf.mxu0 }
 0x21b   :  { %v1346_v15 = vpop.eup %1345  ;;  %v987_v60 = vadd.f32 %v1161_v25, %v975_v55 }
 0x21c   :  { %v998_v53 = vadd.f32 1.0, %v1346_v15 }
 0x21d   :  { %v993_v61 = vmul.f32 0.70710677, %v987_v60  ;;  %v990_v54 = vmul.f32 0.5, %v987_v60 }
 0x21e   :  { %v1001_v52 = vmul.f32 %v998_v53, %v989_v51 }
 0x21f   :  { %1347 = verf.f32 %v993_v61 }
 0x220   :  { %1284 = vmatmul.mubr.msk.f32.vlgmr.msra.gmra.mxu1 %vm799_vm12, %v1001_v52 }
 0x221   :  { %1286 = vmatprep.mubr.msk.f32.mxu1 %vm1441_vm0, %v1440_v0 }
 0x22c   :  { %v1348_v49 = vpop.eup %1347 }
 0x22d   :  { %v999_v12 = vadd.f32 1.0, %v1348_v49 }
 0x22f   :  { %v1002_v62 = vmul.f32 %v999_v12, %v990_v54 }
 0x231   :  { %1287 = vmatmul.mubr.msk.f32.gmra.mxu1 %vm799_vm12, %v1002_v62 }
 0x2d7   :  { %v1093_v28 = vpop.f32.mrf.mxu0 }
 0x2d8   :  { %v1094_v1 = vadd.f32 %v1162_v26, %v1093_v28 }
 0x2d9   :  { %v1282_v2 = vpop.f32.mrf.mxu0 }
 0x2da   :  { %1107 = vst [vmem:[#allocation8] sm:$0xff] %v1094_v1 }
 0x2e0   :  { %v1098_v24 = vpop.f32.mrf.mxu1 }
 0x2e1   :  { %v1099_v3 = vadd.f32 %v1162_v26, %v1098_v24 }
 0x2e2   :  { %v1285_v22 = vpop.f32.mrf.mxu1 }
 0x2e3   :  { %1108 = vst [vmem:[#allocation8 + $0x8] sm:$0xff] %v1099_v3 }
 0x2f1   :  { %v1103_v0 = vpop.f32.mrf.mxu1 }
 0x2f2   :  { %v1104_v27 = vadd.f32 %v1162_v26, %v1103_v0 }
 0x2f3   :  { %v1288_v63 = vpop.f32.mrf.mxu1 }
 0x2f4   :  { %1109 = vst [vmem:[#allocation8 + $0x10] sm:$0xff] %v1104_v27 }
 0x2f5   :  { %1420 = shalt.err (!%p1417_p5)
}
 0x2f6   :  { %1121 = dma.vmem_to_hbm [thread:$0]  %s1116_s25, 384, %s1763_s7, [#allocation4], %s1437_s29, %s1437_s29, %s1438_s30  }
 0x2f7   :  { %1433 = dma.done.wait [#allocation4], 384  }
 0x2f8   :  { %1434 = vsyncadd [#allocation4], 4294966912 }
 0x2f9   :  { %1125 = vsyncpa [#allocation3], 1 }
 0x2fa   :  { %1126 = vsyncpa [#allocation6], 1 }
 0x2fb   :  { %1127 = vsyncpa [#allocation4], 1 }

</bundles_post_ra>
